<compile_context>
chip_gen: v5e
topology: v5e:2x2
jax: 0.10.0
libtpu: 0.0.40
codegen_flags: <defaults>
</compile_context>

<pallas_src>
import jax
import jax.numpy as jnp
from jax import lax
from jax.experimental import pallas as pl
from jax.experimental.pallas import tpu as pltpu


# ----------------------------------------------------------------------------
# Row-order helpers (in-VMEM, value level).  "bm" = batch-major rows (b*T + t),
# "tm" = time-major (t, b, feature).  For bb == 1 both orders coincide and the
# reorder degenerates to a free unit-dim reshape.
# ----------------------------------------------------------------------------
def _rows_bm_to_tm(x2, bb, T):
    """(bb*T, F) batch-major -> (T, bb, F) time-major."""
    F = x2.shape[-1]
    if bb == 1:
        return x2[:, None, :]
    return jnp.transpose(x2.reshape(bb, T, F), (1, 0, 2))


def _rows_tm_to_bm(x3, bb, T):
    """(T, bb, F) time-major -> (bb*T, F) batch-major."""
    F = x3.shape[-1]
    if bb == 1:
        return x3.reshape(T, F)
    return jnp.transpose(x3, (1, 0, 2)).reshape(bb * T, F)


# ----------------------------------------------------------------------------
# Kernel.  Grid = (num_batch_blocks, num_vocab_tiles).
#
#   x_ref    : (bb, T, E)   f32   batch-major input block
#   wih_ref  : (E, 4H)      bf16  W_ih^T  (PyTorch gate order i, f, g, o)
#   whh_ref  : (H, 4H)      bf16  W_hh^T
#   b_ref    : (1, 4H)      f32   b_ih + b_hh (fused once)
#   wlin_ref : (H, tv)      bf16  W_linear^T tile
#   blin_ref : (1, tv)      f32   b_linear tile
#   out_ref  : (bb*T, tv)   f32   logits tile, batch-major rows (b*T + t)
#   pre_ref  : (T, bb, 4H)  f32   scratch: x @ W_ih^T + bias, time-major
#   hs_tm    : (T, bb, H)   bf16  scratch: hidden states, time-major
#   hs_bm    : (bb*T, H)    bf16  scratch: hidden states, batch-major
# ----------------------------------------------------------------------------
def lstm_decoder_kernel(x_ref, wih_ref, whh_ref, b_ref, wlin_ref, blin_ref,
                        out_ref, pre_ref, hs_tm_ref, hs_bm_ref):
    T, bb, H = hs_tm_ref.shape
    E = x_ref.shape[-1]

    # Recurrence runs once per batch block (first vocab tile); its scratch
    # results persist across the remaining vocab tiles of this block.
    @pl.when(pl.program_id(1) == 0)
    def _recurrence():
        # (1) Batched input transform: ONE (bb*T, E) x (E, 4H) MXU matmul with
        #     the fused bias, entirely off the recurrent critical path.
        x_bm = x_ref[...].reshape(bb * T, E).astype(wih_ref.dtype)
        pre_bm = (jnp.dot(x_bm, wih_ref[...],
                          preferred_element_type=jnp.float32) + b_ref[...])
        # One in-VMEM reorder to time-major so the per-step read is a clean
        # leading-axis dynamic index (free for bb == 1).
        # TODO(synk): for long T on v7x, store pre in bf16 or compute it in
        # T-chunks interleaved with the recurrence to free VMEM for bigger
        # W_lin tiles.
        pre_ref[...] = _rows_bm_to_tm(pre_bm, bb, T)

        # (2) Recurrence: only h @ W_hh^T stays on the serial chain; h/c are
        #     carried in f32, only the matmul operand is rounded to bf16.
        def step(t, carry):
            h, c = carry
            gates = pre_ref[t] + jnp.dot(h.astype(whh_ref.dtype), whh_ref[...],
                                         preferred_element_type=jnp.float32)
            i_g = jax.nn.sigmoid(gates[:, 0 * H:1 * H])
            f_g = jax.nn.sigmoid(gates[:, 1 * H:2 * H])
            g_g = jnp.tanh(gates[:, 2 * H:3 * H])
            o_g = jax.nn.sigmoid(gates[:, 3 * H:4 * H])
            c = f_g * c + i_g * g_g
            h = o_g * jnp.tanh(c)
            hs_tm_ref[t] = h.astype(hs_tm_ref.dtype)   # one contiguous store
            return h, c

        zeros = jnp.zeros((bb, H), jnp.float32)
        lax.fori_loop(0, T, step, (zeros, zeros), unroll=(T <= 16))

        # (3) One in-VMEM reorder to batch-major so every projection tile
        #     writes (B, T, V) row order directly (no output HBM transpose).
        hs_bm_ref[...] = _rows_tm_to_bm(hs_tm_ref[...], bb, T)

    # (4) Vocab projection for this (batch-block, vocab-tile): one bf16 MXU
    #     matmul with the bias folded in; lane-dense unmasked output stores.
    # TODO(synk): emit bf16 logits if the downstream loss tolerates it (halves
    # the dominant HBM writeback at production vocab sizes).
    out_ref[...] = (jnp.dot(hs_bm_ref[...], wlin_ref[...],
                            preferred_element_type=jnp.float32)
                    + blin_ref[...]).astype(out_ref.dtype)


# ----------------------------------------------------------------------------
# Tiling heuristics + VMEM budget
# ----------------------------------------------------------------------------
def _pick_batch_block(B, T):
    # Split the batch into two blocks when legal so v7x's two TensorCores each
    # run an independent recurrence (no effect on 1-TC v5e/v6e).
    if B % 2 == 0 and ((B // 2) * T) % 8 == 0:
        return B // 2
    return B


def _pick_vocab_tile(V):
    # Lane-dense vocab tiles; prefer multiples of 256 to fill the 256-wide MXU
    # on v6e/v7x (128 suffices on v5e), capped so W_lin/out tiles still
    # double-buffer comfortably at production sizes.
    for tv in (1024, 512, 256, 128):
        if V % tv == 0:
            return tv
    return V


def _vmem_limit_bytes(bb, T, E, H, tv):
    f32, bf16 = 4, 2
    per_step = (
        2 * bb * T * E * f32          # x block (double-buffered)
        + 2 * E * 4 * H * bf16        # W_ih^T
        + 2 * H * 4 * H * bf16        # W_hh^T
        + 2 * 4 * H * f32             # fused LSTM bias
        + 2 * H * tv * bf16           # W_lin^T tile
        + 2 * tv * f32                # b_lin tile
        + 2 * bb * T * tv * f32       # logits tile
        + T * bb * 4 * H * f32        # pre scratch
        + T * bb * H * bf16           # hs time-major scratch
        + bb * T * H * bf16           # hs batch-major scratch
    )
    # 2x headroom for (8,128)/(16,128) tile padding + compiler scratch; floor
    # covers the toy shapes' padding blow-up; ceiling stays inside v7x's
    # 64 MiB physical VMEM (v5e/v6e have 128 MiB).
    return int(min(max(2 * per_step, 8 * 1024 * 1024), 48 * 1024 * 1024))


def _run_lstm_decoder(x, w_ih_t, w_hh_t, bias, w_lin_t, b_lin, *,
                      block_b, block_v):
    B, T, E = x.shape
    H = w_hh_t.shape[0]
    V = w_lin_t.shape[1]
    bb, tv = block_b, block_v
    assert B % bb == 0 and V % tv == 0
    assert (bb * T) % 8 == 0 or bb * T == B * T
    nb, nv = B // bb, V // tv

    return pl.pallas_call(
        lstm_decoder_kernel,
        out_shape=jax.ShapeDtypeStruct((B * T, V), jnp.float32),
        grid_spec=pltpu.PrefetchScalarGridSpec(
            num_scalar_prefetch=0,
            grid=(nb, nv),
            in_specs=[
                pl.BlockSpec((bb, T, E), lambda b, v: (b, 0, 0)),     # x
                pl.BlockSpec((E, 4 * H), lambda b, v: (0, 0)),        # W_ih^T
                pl.BlockSpec((H, 4 * H), lambda b, v: (0, 0)),        # W_hh^T
                pl.BlockSpec((1, 4 * H), lambda b, v: (0, 0)),        # bias
                pl.BlockSpec((H, tv), lambda b, v: (0, v)),           # W_lin^T
                pl.BlockSpec((1, tv), lambda b, v: (0, v)),           # b_lin
            ],
            out_specs=pl.BlockSpec((bb * T, tv), lambda b, v: (b, v)),
            scratch_shapes=[
                pltpu.VMEM((T, bb, 4 * H), jnp.float32),   # pre-activations
                pltpu.VMEM((T, bb, H), jnp.bfloat16),      # hidden, time-major
                pltpu.VMEM((bb * T, H), jnp.bfloat16),     # hidden, batch-major
            ],
        ),
        compiler_params=pltpu.CompilerParams(
            dimension_semantics=("parallel", "arbitrary"),
            vmem_limit_bytes=_vmem_limit_bytes(bb, T, E, H, tv),
        ),
    )(x, w_ih_t, w_hh_t, bias, w_lin_t, b_lin)


# ----------------------------------------------------------------------------
# DecoderRNN parameters + forward (mirrors the PyTorch module semantics)
# ----------------------------------------------------------------------------
def init_params(key, embed_size, hidden_size, vocab_size):
    ks = jax.random.split(key, 7)
    s = 0.05
    return {
        "embed":  s * jax.random.normal(ks[0], (vocab_size, embed_size), jnp.float32),
        "w_ih":   s * jax.random.normal(ks[1], (4 * hidden_size, embed_size), jnp.float32),
        "w_hh":   s * jax.random.normal(ks[2], (4 * hidden_size, hidden_size), jnp.float32),
        "b_ih":   s * jax.random.normal(ks[3], (4 * hidden_size,), jnp.float32),
        "b_hh":   s * jax.random.normal(ks[4], (4 * hidden_size,), jnp.float32),
        "w_lin":  s * jax.random.normal(ks[5], (vocab_size, hidden_size), jnp.float32),
        "b_lin":  s * jax.random.normal(ks[6], (vocab_size,), jnp.float32),
    }


def prepare_params(params):
    """One-time conversion to kernel layout: transposed, bf16, fused biases."""
    return {
        "embed":   params["embed"],                               # (V, E) f32
        "w_ih_t":  params["w_ih"].T.astype(jnp.bfloat16),         # (E, 4H)
        "w_hh_t":  params["w_hh"].T.astype(jnp.bfloat16),         # (H, 4H)
        "bias":    (params["b_ih"] + params["b_hh"])[None, :],    # (1, 4H) f32
        "w_lin_t": params["w_lin"].T.astype(jnp.bfloat16),        # (H, V)
        "b_lin":   params["b_lin"][None, :],                      # (1, V) f32
    }


@jax.jit
def decoder_forward(prep, features, captions):
    # captions = captions[:, :-1]; embed; concat(features.unsqueeze(1), emb)
    # TODO(synk): the embedding gather + concat stay as plain XLA ops; they
    # could be folded into the kernel with scalar-prefetched token ids.
    captions_trim = captions[:, :-1]                                   # (B, L-1)
    emb = jnp.take(prep["embed"], captions_trim, axis=0)               # (B, L-1, E)
    x = jnp.concatenate([features[:, None, :], emb], axis=1)           # (B, T, E)
    B, T, _ = x.shape
    V = prep["w_lin_t"].shape[1]
    out_flat = _run_lstm_decoder(
        x, prep["w_ih_t"], prep["w_hh_t"], prep["bias"],
        prep["w_lin_t"], prep["b_lin"],
        block_b=_pick_batch_block(B, T), block_v=_pick_vocab_tile(V))  # (B*T, V)
    return out_flat.reshape(B, T, V)   # free reshape (kernel wrote batch-major)


# Pure-JAX float32 reference (lax.scan LSTM) for the correctness check.
def decoder_forward_ref(params, features, captions):
    captions_trim = captions[:, :-1]
    emb = jnp.take(params["embed"], captions_trim, axis=0)
    x = jnp.concatenate([features[:, None, :], emb], axis=1)           # (B, T, E)
    B = x.shape[0]
    H = params["w_hh"].shape[1]

    def step(carry, x_t):
        h, c = carry
        gates = (x_t @ params["w_ih"].T + h @ params["w_hh"].T
                 + params["b_ih"] + params["b_hh"])
        i_g = jax.nn.sigmoid(gates[:, 0 * H:1 * H])
        f_g = jax.nn.sigmoid(gates[:, 1 * H:2 * H])
        g_g = jnp.tanh(gates[:, 2 * H:3 * H])
        o_g = jax.nn.sigmoid(gates[:, 3 * H:4 * H])
        c = f_g * c + i_g * g_g
        h = o_g * jnp.tanh(c)
        return (h, c), h

    h0 = jnp.zeros((B, H), jnp.float32)
    c0 = jnp.zeros((B, H), jnp.float32)
    _, hs = lax.scan(step, (h0, c0), jnp.transpose(x, (1, 0, 2)))      # (T, B, H)
    hs = jnp.transpose(hs, (1, 0, 2))                                  # (B, T, H)
    return hs @ params["w_lin"].T + params["b_lin"]


# TODO(synk): DecoderRNN.sample() (greedy token-by-token decode with early
# stop) is a host-driven loop and is not implemented as a Pallas kernel.

if __name__ == "__main__":
    # Small shapes consistent with the module: seq length after concat T = 8,
    # vocab chosen so the projection grid has 2 vocab tiles and 2 batch blocks.
    embed_size, hidden_size, vocab_size = 32, 32, 512
    batch, caption_len = 2, 8

    key = jax.random.PRNGKey(0)
    kp, kf, kc = jax.random.split(key, 3)

    params = init_params(kp, embed_size, hidden_size, vocab_size)
    prep = prepare_params(params)
    features = jax.random.normal(kf, (batch, embed_size), jnp.float32)
    captions = jax.random.randint(kc, (batch, caption_len), 0, vocab_size,
                                  dtype=jnp.int32)

    out = decoder_forward(prep, features, captions)
    out = jax.block_until_ready(out)

    ref = decoder_forward_ref(params, features, captions)
    assert out.shape == (batch, caption_len, vocab_size), out.shape
    # bf16 matmul operands / bf16 hidden-state scratch -> looser tolerance.
    assert jnp.allclose(out, ref, atol=1e-2, rtol=1e-2), "mismatch vs reference"

    print("KERNEL_OK")
</pallas_src>

<mosaic_0001>
module attributes {stable_mosaic.version = 11 : i64} {
  func.func @lstm_decoder_kernel(%arg0: i32, %arg1: i32, %arg2: memref<1x8x32xf32, #tpu.memory_space<vmem>>, %arg3: memref<32x128xbf16, #tpu.memory_space<vmem>>, %arg4: memref<32x128xbf16, #tpu.memory_space<vmem>>, %arg5: memref<1x128xf32, #tpu.memory_space<vmem>>, %arg6: memref<32x512xbf16, #tpu.memory_space<vmem>>, %arg7: memref<1x512xf32, #tpu.memory_space<vmem>>, %arg8: memref<8x512xf32, #tpu.memory_space<vmem>>, %arg9: memref<8x1x128xf32, #tpu.memory_space<vmem>>, %arg10: memref<8x1x32xbf16, #tpu.memory_space<vmem>>, %arg11: memref<8x32xbf16, #tpu.memory_space<vmem>>) attributes {dimension_semantics = [#tpu.dimension_semantics<parallel>, #tpu.dimension_semantics<arbitrary>], iteration_bounds = array<i64: 2, 1>, scalar_prefetch = 0 : i64, scratch_operands = 3 : i64, tpu.core_type = #tpu.core_type<tc>, window_params = [{transform_indices = @transform_0, window_bounds = array<i64: 1, 8, 32>}, {pipeline_mode = #tpu.pipeline_mode<synchronous>, transform_indices = @transform_1, window_bounds = array<i64: 32, 128>}, {pipeline_mode = #tpu.pipeline_mode<synchronous>, transform_indices = @transform_2, window_bounds = array<i64: 32, 128>}, {pipeline_mode = #tpu.pipeline_mode<synchronous>, transform_indices = @transform_3, window_bounds = array<i64: 1, 128>}, {transform_indices = @transform_4, window_bounds = array<i64: 32, 512>}, {transform_indices = @transform_5, window_bounds = array<i64: 1, 512>}, {transform_indices = @transform_6, window_bounds = array<i64: 8, 512>}]} {
    %c0_i32 = arith.constant 0 : i32
    %0 = arith.cmpi eq, %arg1, %c0_i32 : i32
    %1 = arith.extui %0 : i1 to i32
    %c0_i32_0 = arith.constant 0 : i32
    %2 = arith.cmpi ne, %1, %c0_i32_0 : i32
    scf.if %2 {
      %c0_8 = arith.constant 0 : index
      %c0_9 = arith.constant 0 : index
      %c0_10 = arith.constant 0 : index
      %10 = vector.load %arg2[%c0_8, %c0_9, %c0_10] : memref<1x8x32xf32, #tpu.memory_space<vmem>>, vector<1x8x32xf32>
      %11 = vector.shape_cast %10 : vector<1x8x32xf32> to vector<8x32xf32>
      %12 = arith.truncf %11 : vector<8x32xf32> to vector<8x32xbf16>
      %c0_11 = arith.constant 0 : index
      %c0_12 = arith.constant 0 : index
      %13 = vector.load %arg3[%c0_11, %c0_12] : memref<32x128xbf16, #tpu.memory_space<vmem>>, vector<32x128xbf16>
      %cst_13 = arith.constant dense<0.000000e+00> : vector<8x128xf32>
      %14 = tpu.matmul %12, %13, %cst_13 {dimension_numbers = #tpu.dot_dimension_numbers<[1], [0], [0], [1], [0, 0, 1, 1], [], []>} : vector<8x32xbf16>, vector<32x128xbf16>, vector<8x128xf32> -> vector<8x128xf32>
      %c0_14 = arith.constant 0 : index
      %c0_15 = arith.constant 0 : index
      %15 = vector.load %arg5[%c0_14, %c0_15] : memref<1x128xf32, #tpu.memory_space<vmem>>, vector<1x128xf32>
      %16 = vector.broadcast %15 : vector<1x128xf32> to vector<8x128xf32>
      %17 = arith.addf %14, %16 : vector<8x128xf32>
      %18 = vector.shape_cast %17 : vector<8x128xf32> to vector<8x1x128xf32>
      %c0_16 = arith.constant 0 : index
      %c0_17 = arith.constant 0 : index
      %c0_18 = arith.constant 0 : index
      %19 = vector.load %arg9[%c0_16, %c0_17, %c0_18] : memref<8x1x128xf32, #tpu.memory_space<vmem>>, vector<8x1x128xf32>
      tpu.vector_store %arg9[%c0_16, %c0_17, %c0_18], %18 {strides = array<i32>} : memref<8x1x128xf32, #tpu.memory_space<vmem>>, vector<8x1x128xf32>,
      %cst_19 = arith.constant 0.000000e+00 : f32
      %20 = vector.broadcast %cst_19 : f32 to vector<1x32xf32>
      %c0_i32_20 = arith.constant 0 : i32
      %21 = arith.index_cast %c0_i32_20 : i32 to index
      %c0_21 = arith.constant 0 : index
      %c0_22 = arith.constant 0 : index
      %22 = vector.load %arg9[%21, %c0_21, %c0_22] : memref<8x1x128xf32, #tpu.memory_space<vmem>>, vector<1x1x128xf32>
      %23 = vector.shape_cast %22 : vector<1x1x128xf32> to vector<1x128xf32>
      %24 = arith.truncf %20 : vector<1x32xf32> to vector<1x32xbf16>
      %c0_23 = arith.constant 0 : index
      %c0_24 = arith.constant 0 : index
      %25 = vector.load %arg4[%c0_23, %c0_24] : memref<32x128xbf16, #tpu.memory_space<vmem>>, vector<32x128xbf16>
      %cst_25 = arith.constant dense<0.000000e+00> : vector<1x128xf32>
      %26 = tpu.matmul %24, %25, %cst_25 {dimension_numbers = #tpu.dot_dimension_numbers<[1], [0], [0], [1], [0, 0, 1, 1], [], []>} : vector<1x32xbf16>, vector<32x128xbf16>, vector<1x128xf32> -> vector<1x128xf32>
      %27 = arith.addf %23, %26 : vector<1x128xf32>
      %28 = vector.extract_strided_slice %27 {offsets = [0, 0], sizes = [1, 32], strides = [1, 1]} : vector<1x128xf32> to vector<1x32xf32>
      %29 = arith.negf %28 : vector<1x32xf32>
      %30 = math.exp %29 : vector<1x32xf32>
      %cst_26 = arith.constant 1.000000e+00 : f32
      %31 = vector.broadcast %cst_26 : f32 to vector<1x32xf32>
      %32 = arith.addf %31, %30 : vector<1x32xf32>
      %33 = arith.divf %31, %32 : vector<1x32xf32>
      %34 = vector.extract_strided_slice %27 {offsets = [0, 32], sizes = [1, 32], strides = [1, 1]} : vector<1x128xf32> to vector<1x32xf32>
      %35 = arith.negf %34 : vector<1x32xf32>
      %36 = math.exp %35 : vector<1x32xf32>
      %cst_27 = arith.constant 1.000000e+00 : f32
      %37 = vector.broadcast %cst_27 : f32 to vector<1x32xf32>
      %38 = arith.addf %37, %36 : vector<1x32xf32>
      %39 = arith.divf %37, %38 : vector<1x32xf32>
      %40 = vector.extract_strided_slice %27 {offsets = [0, 64], sizes = [1, 32], strides = [1, 1]} : vector<1x128xf32> to vector<1x32xf32>
      %41 = math.tanh %40 : vector<1x32xf32>
      %42 = vector.extract_strided_slice %27 {offsets = [0, 96], sizes = [1, 32], strides = [1, 1]} : vector<1x128xf32> to vector<1x32xf32>
      %43 = arith.negf %42 : vector<1x32xf32>
      %44 = math.exp %43 : vector<1x32xf32>
      %cst_28 = arith.constant 1.000000e+00 : f32
      %45 = vector.broadcast %cst_28 : f32 to vector<1x32xf32>
      %46 = arith.addf %45, %44 : vector<1x32xf32>
      %47 = arith.divf %45, %46 : vector<1x32xf32>
      %48 = arith.mulf %39, %20 : vector<1x32xf32>
      %49 = arith.mulf %33, %41 : vector<1x32xf32>
      %50 = arith.addf %48, %49 : vector<1x32xf32>
      %51 = math.tanh %50 : vector<1x32xf32>
      %52 = arith.mulf %47, %51 : vector<1x32xf32>
      %53 = arith.truncf %52 : vector<1x32xf32> to vector<1x32xbf16>
      %54 = arith.index_cast %c0_i32_20 : i32 to index
      %c0_29 = arith.constant 0 : index
      %c0_30 = arith.constant 0 : index
      %55 = vector.load %arg10[%54, %c0_29, %c0_30] : memref<8x1x32xbf16, #tpu.memory_space<vmem>>, vector<1x1x32xbf16>
      %56 = vector.shape_cast %55 : vector<1x1x32xbf16> to vector<1x32xbf16>
      %57 = vector.shape_cast %53 : vector<1x32xbf16> to vector<1x1x32xbf16>
      tpu.vector_store %arg10[%54, %c0_29, %c0_30], %57 {strides = array<i32>} : memref<8x1x32xbf16, #tpu.memory_space<vmem>>, vector<1x1x32xbf16>,
      %c1_i32 = arith.constant 1 : i32
      %58 = arith.index_cast %c1_i32 : i32 to index
      %c0_31 = arith.constant 0 : index
      %c0_32 = arith.constant 0 : index
      %59 = vector.load %arg9[%58, %c0_31, %c0_32] : memref<8x1x128xf32, #tpu.memory_space<vmem>>, vector<1x1x128xf32>
      %60 = vector.shape_cast %59 : vector<1x1x128xf32> to vector<1x128xf32>
      %61 = arith.truncf %52 : vector<1x32xf32> to vector<1x32xbf16>
      %c0_33 = arith.constant 0 : index
      %c0_34 = arith.constant 0 : index
      %62 = vector.load %arg4[%c0_33, %c0_34] : memref<32x128xbf16, #tpu.memory_space<vmem>>, vector<32x128xbf16>
      %cst_35 = arith.constant dense<0.000000e+00> : vector<1x128xf32>
      %63 = tpu.matmul %61, %62, %cst_35 {dimension_numbers = #tpu.dot_dimension_numbers<[1], [0], [0], [1], [0, 0, 1, 1], [], []>} : vector<1x32xbf16>, vector<32x128xbf16>, vector<1x128xf32> -> vector<1x128xf32>
      %64 = arith.addf %60, %63 : vector<1x128xf32>
      %65 = vector.extract_strided_slice %64 {offsets = [0, 0], sizes = [1, 32], strides = [1, 1]} : vector<1x128xf32> to vector<1x32xf32>
      %66 = arith.negf %65 : vector<1x32xf32>
      %67 = math.exp %66 : vector<1x32xf32>
      %cst_36 = arith.constant 1.000000e+00 : f32
      %68 = vector.broadcast %cst_36 : f32 to vector<1x32xf32>
      %69 = arith.addf %68, %67 : vector<1x32xf32>
      %70 = arith.divf %68, %69 : vector<1x32xf32>
      %71 = vector.extract_strided_slice %64 {offsets = [0, 32], sizes = [1, 32], strides = [1, 1]} : vector<1x128xf32> to vector<1x32xf32>
      %72 = arith.negf %71 : vector<1x32xf32>
      %73 = math.exp %72 : vector<1x32xf32>
      %cst_37 = arith.constant 1.000000e+00 : f32
      %74 = vector.broadcast %cst_37 : f32 to vector<1x32xf32>
      %75 = arith.addf %74, %73 : vector<1x32xf32>
      %76 = arith.divf %74, %75 : vector<1x32xf32>
      %77 = vector.extract_strided_slice %64 {offsets = [0, 64], sizes = [1, 32], strides = [1, 1]} : vector<1x128xf32> to vector<1x32xf32>
      %78 = math.tanh %77 : vector<1x32xf32>
      %79 = vector.extract_strided_slice %64 {offsets = [0, 96], sizes = [1, 32], strides = [1, 1]} : vector<1x128xf32> to vector<1x32xf32>
      %80 = arith.negf %79 : vector<1x32xf32>
      %81 = math.exp %80 : vector<1x32xf32>
      %cst_38 = arith.constant 1.000000e+00 : f32
      %82 = vector.broadcast %cst_38 : f32 to vector<1x32xf32>
      %83 = arith.addf %82, %81 : vector<1x32xf32>
      %84 = arith.divf %82, %83 : vector<1x32xf32>
      %85 = arith.mulf %76, %50 : vector<1x32xf32>
      %86 = arith.mulf %70, %78 : vector<1x32xf32>
      %87 = arith.addf %85, %86 : vector<1x32xf32>
      %88 = math.tanh %87 : vector<1x32xf32>
      %89 = arith.mulf %84, %88 : vector<1x32xf32>
      %90 = arith.truncf %89 : vector<1x32xf32> to vector<1x32xbf16>
      %91 = arith.index_cast %c1_i32 : i32 to index
      %c0_39 = arith.constant 0 : index
      %c0_40 = arith.constant 0 : index
      %92 = vector.load %arg10[%91, %c0_39, %c0_40] : memref<8x1x32xbf16, #tpu.memory_space<vmem>>, vector<1x1x32xbf16>
      %93 = vector.shape_cast %92 : vector<1x1x32xbf16> to vector<1x32xbf16>
      %94 = vector.shape_cast %90 : vector<1x32xbf16> to vector<1x1x32xbf16>
      tpu.vector_store %arg10[%91, %c0_39, %c0_40], %94 {strides = array<i32>} : memref<8x1x32xbf16, #tpu.memory_space<vmem>>, vector<1x1x32xbf16>,
      %c2_i32 = arith.constant 2 : i32
      %95 = arith.index_cast %c2_i32 : i32 to index
      %c0_41 = arith.constant 0 : index
      %c0_42 = arith.constant 0 : index
      %96 = vector.load %arg9[%95, %c0_41, %c0_42] : memref<8x1x128xf32, #tpu.memory_space<vmem>>, vector<1x1x128xf32>
      %97 = vector.shape_cast %96 : vector<1x1x128xf32> to vector<1x128xf32>
      %98 = arith.truncf %89 : vector<1x32xf32> to vector<1x32xbf16>
      %c0_43 = arith.constant 0 : index
      %c0_44 = arith.constant 0 : index
      %99 = vector.load %arg4[%c0_43, %c0_44] : memref<32x128xbf16, #tpu.memory_space<vmem>>, vector<32x128xbf16>
      %cst_45 = arith.constant dense<0.000000e+00> : vector<1x128xf32>
      %100 = tpu.matmul %98, %99, %cst_45 {dimension_numbers = #tpu.dot_dimension_numbers<[1], [0], [0], [1], [0, 0, 1, 1], [], []>} : vector<1x32xbf16>, vector<32x128xbf16>, vector<1x128xf32> -> vector<1x128xf32>
      %101 = arith.addf %97, %100 : vector<1x128xf32>
      %102 = vector.extract_strided_slice %101 {offsets = [0, 0], sizes = [1, 32], strides = [1, 1]} : vector<1x128xf32> to vector<1x32xf32>
      %103 = arith.negf %102 : vector<1x32xf32>
      %104 = math.exp %103 : vector<1x32xf32>
      %cst_46 = arith.constant 1.000000e+00 : f32
      %105 = vector.broadcast %cst_46 : f32 to vector<1x32xf32>
      %106 = arith.addf %105, %104 : vector<1x32xf32>
      %107 = arith.divf %105, %106 : vector<1x32xf32>
      %108 = vector.extract_strided_slice %101 {offsets = [0, 32], sizes = [1, 32], strides = [1, 1]} : vector<1x128xf32> to vector<1x32xf32>
      %109 = arith.negf %108 : vector<1x32xf32>
      %110 = math.exp %109 : vector<1x32xf32>
      %cst_47 = arith.constant 1.000000e+00 : f32
      %111 = vector.broadcast %cst_47 : f32 to vector<1x32xf32>
      %112 = arith.addf %111, %110 : vector<1x32xf32>
      %113 = arith.divf %111, %112 : vector<1x32xf32>
      %114 = vector.extract_strided_slice %101 {offsets = [0, 64], sizes = [1, 32], strides = [1, 1]} : vector<1x128xf32> to vector<1x32xf32>
      %115 = math.tanh %114 : vector<1x32xf32>
      %116 = vector.extract_strided_slice %101 {offsets = [0, 96], sizes = [1, 32], strides = [1, 1]} : vector<1x128xf32> to vector<1x32xf32>
      %117 = arith.negf %116 : vector<1x32xf32>
      %118 = math.exp %117 : vector<1x32xf32>
      %cst_48 = arith.constant 1.000000e+00 : f32
      %119 = vector.broadcast %cst_48 : f32 to vector<1x32xf32>
      %120 = arith.addf %119, %118 : vector<1x32xf32>
      %121 = arith.divf %119, %120 : vector<1x32xf32>
      %122 = arith.mulf %113, %87 : vector<1x32xf32>
      %123 = arith.mulf %107, %115 : vector<1x32xf32>
      %124 = arith.addf %122, %123 : vector<1x32xf32>
      %125 = math.tanh %124 : vector<1x32xf32>
      %126 = arith.mulf %121, %125 : vector<1x32xf32>
      %127 = arith.truncf %126 : vector<1x32xf32> to vector<1x32xbf16>
      %128 = arith.index_cast %c2_i32 : i32 to index
      %c0_49 = arith.constant 0 : index
      %c0_50 = arith.constant 0 : index
      %129 = vector.load %arg10[%128, %c0_49, %c0_50] : memref<8x1x32xbf16, #tpu.memory_space<vmem>>, vector<1x1x32xbf16>
      %130 = vector.shape_cast %129 : vector<1x1x32xbf16> to vector<1x32xbf16>
      %131 = vector.shape_cast %127 : vector<1x32xbf16> to vector<1x1x32xbf16>
      tpu.vector_store %arg10[%128, %c0_49, %c0_50], %131 {strides = array<i32>} : memref<8x1x32xbf16, #tpu.memory_space<vmem>>, vector<1x1x32xbf16>,
      %c3_i32 = arith.constant 3 : i32
      %132 = arith.index_cast %c3_i32 : i32 to index
      %c0_51 = arith.constant 0 : index
      %c0_52 = arith.constant 0 : index
      %133 = vector.load %arg9[%132, %c0_51, %c0_52] : memref<8x1x128xf32, #tpu.memory_space<vmem>>, vector<1x1x128xf32>
      %134 = vector.shape_cast %133 : vector<1x1x128xf32> to vector<1x128xf32>
      %135 = arith.truncf %126 : vector<1x32xf32> to vector<1x32xbf16>
      %c0_53 = arith.constant 0 : index
      %c0_54 = arith.constant 0 : index
      %136 = vector.load %arg4[%c0_53, %c0_54] : memref<32x128xbf16, #tpu.memory_space<vmem>>, vector<32x128xbf16>
      %cst_55 = arith.constant dense<0.000000e+00> : vector<1x128xf32>
      %137 = tpu.matmul %135, %136, %cst_55 {dimension_numbers = #tpu.dot_dimension_numbers<[1], [0], [0], [1], [0, 0, 1, 1], [], []>} : vector<1x32xbf16>, vector<32x128xbf16>, vector<1x128xf32> -> vector<1x128xf32>
      %138 = arith.addf %134, %137 : vector<1x128xf32>
      %139 = vector.extract_strided_slice %138 {offsets = [0, 0], sizes = [1, 32], strides = [1, 1]} : vector<1x128xf32> to vector<1x32xf32>
      %140 = arith.negf %139 : vector<1x32xf32>
      %141 = math.exp %140 : vector<1x32xf32>
      %cst_56 = arith.constant 1.000000e+00 : f32
      %142 = vector.broadcast %cst_56 : f32 to vector<1x32xf32>
      %143 = arith.addf %142, %141 : vector<1x32xf32>
      %144 = arith.divf %142, %143 : vector<1x32xf32>
      %145 = vector.extract_strided_slice %138 {offsets = [0, 32], sizes = [1, 32], strides = [1, 1]} : vector<1x128xf32> to vector<1x32xf32>
      %146 = arith.negf %145 : vector<1x32xf32>
      %147 = math.exp %146 : vector<1x32xf32>
      %cst_57 = arith.constant 1.000000e+00 : f32
      %148 = vector.broadcast %cst_57 : f32 to vector<1x32xf32>
      %149 = arith.addf %148, %147 : vector<1x32xf32>
      %150 = arith.divf %148, %149 : vector<1x32xf32>
      %151 = vector.extract_strided_slice %138 {offsets = [0, 64], sizes = [1, 32], strides = [1, 1]} : vector<1x128xf32> to vector<1x32xf32>
      %152 = math.tanh %151 : vector<1x32xf32>
      %153 = vector.extract_strided_slice %138 {offsets = [0, 96], sizes = [1, 32], strides = [1, 1]} : vector<1x128xf32> to vector<1x32xf32>
      %154 = arith.negf %153 : vector<1x32xf32>
      %155 = math.exp %154 : vector<1x32xf32>
      %cst_58 = arith.constant 1.000000e+00 : f32
      %156 = vector.broadcast %cst_58 : f32 to vector<1x32xf32>
      %157 = arith.addf %156, %155 : vector<1x32xf32>
      %158 = arith.divf %156, %157 : vector<1x32xf32>
      %159 = arith.mulf %150, %124 : vector<1x32xf32>
      %160 = arith.mulf %144, %152 : vector<1x32xf32>
      %161 = arith.addf %159, %160 : vector<1x32xf32>
      %162 = math.tanh %161 : vector<1x32xf32>
      %163 = arith.mulf %158, %162 : vector<1x32xf32>
      %164 = arith.truncf %163 : vector<1x32xf32> to vector<1x32xbf16>
      %165 = arith.index_cast %c3_i32 : i32 to index
      %c0_59 = arith.constant 0 : index
      %c0_60 = arith.constant 0 : index
      %166 = vector.load %arg10[%165, %c0_59, %c0_60] : memref<8x1x32xbf16, #tpu.memory_space<vmem>>, vector<1x1x32xbf16>
      %167 = vector.shape_cast %166 : vector<1x1x32xbf16> to vector<1x32xbf16>
      %168 = vector.shape_cast %164 : vector<1x32xbf16> to vector<1x1x32xbf16>
      tpu.vector_store %arg10[%165, %c0_59, %c0_60], %168 {strides = array<i32>} : memref<8x1x32xbf16, #tpu.memory_space<vmem>>, vector<1x1x32xbf16>,
      %c4_i32 = arith.constant 4 : i32
      %169 = arith.index_cast %c4_i32 : i32 to index
      %c0_61 = arith.constant 0 : index
      %c0_62 = arith.constant 0 : index
      %170 = vector.load %arg9[%169, %c0_61, %c0_62] : memref<8x1x128xf32, #tpu.memory_space<vmem>>, vector<1x1x128xf32>
      %171 = vector.shape_cast %170 : vector<1x1x128xf32> to vector<1x128xf32>
      %172 = arith.truncf %163 : vector<1x32xf32> to vector<1x32xbf16>
      %c0_63 = arith.constant 0 : index
      %c0_64 = arith.constant 0 : index
      %173 = vector.load %arg4[%c0_63, %c0_64] : memref<32x128xbf16, #tpu.memory_space<vmem>>, vector<32x128xbf16>
      %cst_65 = arith.constant dense<0.000000e+00> : vector<1x128xf32>
      %174 = tpu.matmul %172, %173, %cst_65 {dimension_numbers = #tpu.dot_dimension_numbers<[1], [0], [0], [1], [0, 0, 1, 1], [], []>} : vector<1x32xbf16>, vector<32x128xbf16>, vector<1x128xf32> -> vector<1x128xf32>
      %175 = arith.addf %171, %174 : vector<1x128xf32>
      %176 = vector.extract_strided_slice %175 {offsets = [0, 0], sizes = [1, 32], strides = [1, 1]} : vector<1x128xf32> to vector<1x32xf32>
      %177 = arith.negf %176 : vector<1x32xf32>
      %178 = math.exp %177 : vector<1x32xf32>
      %cst_66 = arith.constant 1.000000e+00 : f32
      %179 = vector.broadcast %cst_66 : f32 to vector<1x32xf32>
      %180 = arith.addf %179, %178 : vector<1x32xf32>
      %181 = arith.divf %179, %180 : vector<1x32xf32>
      %182 = vector.extract_strided_slice %175 {offsets = [0, 32], sizes = [1, 32], strides = [1, 1]} : vector<1x128xf32> to vector<1x32xf32>
      %183 = arith.negf %182 : vector<1x32xf32>
      %184 = math.exp %183 : vector<1x32xf32>
      %cst_67 = arith.constant 1.000000e+00 : f32
      %185 = vector.broadcast %cst_67 : f32 to vector<1x32xf32>
      %186 = arith.addf %185, %184 : vector<1x32xf32>
      %187 = arith.divf %185, %186 : vector<1x32xf32>
      %188 = vector.extract_strided_slice %175 {offsets = [0, 64], sizes = [1, 32], strides = [1, 1]} : vector<1x128xf32> to vector<1x32xf32>
      %189 = math.tanh %188 : vector<1x32xf32>
      %190 = vector.extract_strided_slice %175 {offsets = [0, 96], sizes = [1, 32], strides = [1, 1]} : vector<1x128xf32> to vector<1x32xf32>
      %191 = arith.negf %190 : vector<1x32xf32>
      %192 = math.exp %191 : vector<1x32xf32>
      %cst_68 = arith.constant 1.000000e+00 : f32
      %193 = vector.broadcast %cst_68 : f32 to vector<1x32xf32>
      %194 = arith.addf %193, %192 : vector<1x32xf32>
      %195 = arith.divf %193, %194 : vector<1x32xf32>
      %196 = arith.mulf %187, %161 : vector<1x32xf32>
      %197 = arith.mulf %181, %189 : vector<1x32xf32>
      %198 = arith.addf %196, %197 : vector<1x32xf32>
      %199 = math.tanh %198 : vector<1x32xf32>
      %200 = arith.mulf %195, %199 : vector<1x32xf32>
      %201 = arith.truncf %200 : vector<1x32xf32> to vector<1x32xbf16>
      %202 = arith.index_cast %c4_i32 : i32 to index
      %c0_69 = arith.constant 0 : index
      %c0_70 = arith.constant 0 : index
      %203 = vector.load %arg10[%202, %c0_69, %c0_70] : memref<8x1x32xbf16, #tpu.memory_space<vmem>>, vector<1x1x32xbf16>
      %204 = vector.shape_cast %203 : vector<1x1x32xbf16> to vector<1x32xbf16>
      %205 = vector.shape_cast %201 : vector<1x32xbf16> to vector<1x1x32xbf16>
      tpu.vector_store %arg10[%202, %c0_69, %c0_70], %205 {strides = array<i32>} : memref<8x1x32xbf16, #tpu.memory_space<vmem>>, vector<1x1x32xbf16>,
      %c5_i32 = arith.constant 5 : i32
      %206 = arith.index_cast %c5_i32 : i32 to index
      %c0_71 = arith.constant 0 : index
      %c0_72 = arith.constant 0 : index
      %207 = vector.load %arg9[%206, %c0_71, %c0_72] : memref<8x1x128xf32, #tpu.memory_space<vmem>>, vector<1x1x128xf32>
      %208 = vector.shape_cast %207 : vector<1x1x128xf32> to vector<1x128xf32>
      %209 = arith.truncf %200 : vector<1x32xf32> to vector<1x32xbf16>
      %c0_73 = arith.constant 0 : index
      %c0_74 = arith.constant 0 : index
      %210 = vector.load %arg4[%c0_73, %c0_74] : memref<32x128xbf16, #tpu.memory_space<vmem>>, vector<32x128xbf16>
      %cst_75 = arith.constant dense<0.000000e+00> : vector<1x128xf32>
      %211 = tpu.matmul %209, %210, %cst_75 {dimension_numbers = #tpu.dot_dimension_numbers<[1], [0], [0], [1], [0, 0, 1, 1], [], []>} : vector<1x32xbf16>, vector<32x128xbf16>, vector<1x128xf32> -> vector<1x128xf32>
      %212 = arith.addf %208, %211 : vector<1x128xf32>
      %213 = vector.extract_strided_slice %212 {offsets = [0, 0], sizes = [1, 32], strides = [1, 1]} : vector<1x128xf32> to vector<1x32xf32>
      %214 = arith.negf %213 : vector<1x32xf32>
      %215 = math.exp %214 : vector<1x32xf32>
      %cst_76 = arith.constant 1.000000e+00 : f32
      %216 = vector.broadcast %cst_76 : f32 to vector<1x32xf32>
      %217 = arith.addf %216, %215 : vector<1x32xf32>
      %218 = arith.divf %216, %217 : vector<1x32xf32>
      %219 = vector.extract_strided_slice %212 {offsets = [0, 32], sizes = [1, 32], strides = [1, 1]} : vector<1x128xf32> to vector<1x32xf32>
      %220 = arith.negf %219 : vector<1x32xf32>
      %221 = math.exp %220 : vector<1x32xf32>
      %cst_77 = arith.constant 1.000000e+00 : f32
      %222 = vector.broadcast %cst_77 : f32 to vector<1x32xf32>
      %223 = arith.addf %222, %221 : vector<1x32xf32>
      %224 = arith.divf %222, %223 : vector<1x32xf32>
      %225 = vector.extract_strided_slice %212 {offsets = [0, 64], sizes = [1, 32], strides = [1, 1]} : vector<1x128xf32> to vector<1x32xf32>
      %226 = math.tanh %225 : vector<1x32xf32>
      %227 = vector.extract_strided_slice %212 {offsets = [0, 96], sizes = [1, 32], strides = [1, 1]} : vector<1x128xf32> to vector<1x32xf32>
      %228 = arith.negf %227 : vector<1x32xf32>
      %229 = math.exp %228 : vector<1x32xf32>
      %cst_78 = arith.constant 1.000000e+00 : f32
      %230 = vector.broadcast %cst_78 : f32 to vector<1x32xf32>
      %231 = arith.addf %230, %229 : vector<1x32xf32>
      %232 = arith.divf %230, %231 : vector<1x32xf32>
      %233 = arith.mulf %224, %198 : vector<1x32xf32>
      %234 = arith.mulf %218, %226 : vector<1x32xf32>
      %235 = arith.addf %233, %234 : vector<1x32xf32>
      %236 = math.tanh %235 : vector<1x32xf32>
      %237 = arith.mulf %232, %236 : vector<1x32xf32>
      %238 = arith.truncf %237 : vector<1x32xf32> to vector<1x32xbf16>
      %239 = arith.index_cast %c5_i32 : i32 to index
      %c0_79 = arith.constant 0 : index
      %c0_80 = arith.constant 0 : index
      %240 = vector.load %arg10[%239, %c0_79, %c0_80] : memref<8x1x32xbf16, #tpu.memory_space<vmem>>, vector<1x1x32xbf16>
      %241 = vector.shape_cast %240 : vector<1x1x32xbf16> to vector<1x32xbf16>
      %242 = vector.shape_cast %238 : vector<1x32xbf16> to vector<1x1x32xbf16>
      tpu.vector_store %arg10[%239, %c0_79, %c0_80], %242 {strides = array<i32>} : memref<8x1x32xbf16, #tpu.memory_space<vmem>>, vector<1x1x32xbf16>,
      %c6_i32 = arith.constant 6 : i32
      %243 = arith.index_cast %c6_i32 : i32 to index
      %c0_81 = arith.constant 0 : index
      %c0_82 = arith.constant 0 : index
      %244 = vector.load %arg9[%243, %c0_81, %c0_82] : memref<8x1x128xf32, #tpu.memory_space<vmem>>, vector<1x1x128xf32>
      %245 = vector.shape_cast %244 : vector<1x1x128xf32> to vector<1x128xf32>
      %246 = arith.truncf %237 : vector<1x32xf32> to vector<1x32xbf16>
      %c0_83 = arith.constant 0 : index
      %c0_84 = arith.constant 0 : index
      %247 = vector.load %arg4[%c0_83, %c0_84] : memref<32x128xbf16, #tpu.memory_space<vmem>>, vector<32x128xbf16>
      %cst_85 = arith.constant dense<0.000000e+00> : vector<1x128xf32>
      %248 = tpu.matmul %246, %247, %cst_85 {dimension_numbers = #tpu.dot_dimension_numbers<[1], [0], [0], [1], [0, 0, 1, 1], [], []>} : vector<1x32xbf16>, vector<32x128xbf16>, vector<1x128xf32> -> vector<1x128xf32>
      %249 = arith.addf %245, %248 : vector<1x128xf32>
      %250 = vector.extract_strided_slice %249 {offsets = [0, 0], sizes = [1, 32], strides = [1, 1]} : vector<1x128xf32> to vector<1x32xf32>
      %251 = arith.negf %250 : vector<1x32xf32>
      %252 = math.exp %251 : vector<1x32xf32>
      %cst_86 = arith.constant 1.000000e+00 : f32
      %253 = vector.broadcast %cst_86 : f32 to vector<1x32xf32>
      %254 = arith.addf %253, %252 : vector<1x32xf32>
      %255 = arith.divf %253, %254 : vector<1x32xf32>
      %256 = vector.extract_strided_slice %249 {offsets = [0, 32], sizes = [1, 32], strides = [1, 1]} : vector<1x128xf32> to vector<1x32xf32>
      %257 = arith.negf %256 : vector<1x32xf32>
      %258 = math.exp %257 : vector<1x32xf32>
      %cst_87 = arith.constant 1.000000e+00 : f32
      %259 = vector.broadcast %cst_87 : f32 to vector<1x32xf32>
      %260 = arith.addf %259, %258 : vector<1x32xf32>
      %261 = arith.divf %259, %260 : vector<1x32xf32>
      %262 = vector.extract_strided_slice %249 {offsets = [0, 64], sizes = [1, 32], strides = [1, 1]} : vector<1x128xf32> to vector<1x32xf32>
      %263 = math.tanh %262 : vector<1x32xf32>
      %264 = vector.extract_strided_slice %249 {offsets = [0, 96], sizes = [1, 32], strides = [1, 1]} : vector<1x128xf32> to vector<1x32xf32>
      %265 = arith.negf %264 : vector<1x32xf32>
      %266 = math.exp %265 : vector<1x32xf32>
      %cst_88 = arith.constant 1.000000e+00 : f32
      %267 = vector.broadcast %cst_88 : f32 to vector<1x32xf32>
      %268 = arith.addf %267, %266 : vector<1x32xf32>
      %269 = arith.divf %267, %268 : vector<1x32xf32>
      %270 = arith.mulf %261, %235 : vector<1x32xf32>
      %271 = arith.mulf %255, %263 : vector<1x32xf32>
      %272 = arith.addf %270, %271 : vector<1x32xf32>
      %273 = math.tanh %272 : vector<1x32xf32>
      %274 = arith.mulf %269, %273 : vector<1x32xf32>
      %275 = arith.truncf %274 : vector<1x32xf32> to vector<1x32xbf16>
      %276 = arith.index_cast %c6_i32 : i32 to index
      %c0_89 = arith.constant 0 : index
      %c0_90 = arith.constant 0 : index
      %277 = vector.load %arg10[%276, %c0_89, %c0_90] : memref<8x1x32xbf16, #tpu.memory_space<vmem>>, vector<1x1x32xbf16>
      %278 = vector.shape_cast %277 : vector<1x1x32xbf16> to vector<1x32xbf16>
      %279 = vector.shape_cast %275 : vector<1x32xbf16> to vector<1x1x32xbf16>
      tpu.vector_store %arg10[%276, %c0_89, %c0_90], %279 {strides = array<i32>} : memref<8x1x32xbf16, #tpu.memory_space<vmem>>, vector<1x1x32xbf16>,
      %c7_i32 = arith.constant 7 : i32
      %280 = arith.index_cast %c7_i32 : i32 to index
      %c0_91 = arith.constant 0 : index
      %c0_92 = arith.constant 0 : index
      %281 = vector.load %arg9[%280, %c0_91, %c0_92] : memref<8x1x128xf32, #tpu.memory_space<vmem>>, vector<1x1x128xf32>
      %282 = vector.shape_cast %281 : vector<1x1x128xf32> to vector<1x128xf32>
      %283 = arith.truncf %274 : vector<1x32xf32> to vector<1x32xbf16>
      %c0_93 = arith.constant 0 : index
      %c0_94 = arith.constant 0 : index
      %284 = vector.load %arg4[%c0_93, %c0_94] : memref<32x128xbf16, #tpu.memory_space<vmem>>, vector<32x128xbf16>
      %cst_95 = arith.constant dense<0.000000e+00> : vector<1x128xf32>
      %285 = tpu.matmul %283, %284, %cst_95 {dimension_numbers = #tpu.dot_dimension_numbers<[1], [0], [0], [1], [0, 0, 1, 1], [], []>} : vector<1x32xbf16>, vector<32x128xbf16>, vector<1x128xf32> -> vector<1x128xf32>
      %286 = arith.addf %282, %285 : vector<1x128xf32>
      %287 = vector.extract_strided_slice %286 {offsets = [0, 0], sizes = [1, 32], strides = [1, 1]} : vector<1x128xf32> to vector<1x32xf32>
      %288 = arith.negf %287 : vector<1x32xf32>
      %289 = math.exp %288 : vector<1x32xf32>
      %cst_96 = arith.constant 1.000000e+00 : f32
      %290 = vector.broadcast %cst_96 : f32 to vector<1x32xf32>
      %291 = arith.addf %290, %289 : vector<1x32xf32>
      %292 = arith.divf %290, %291 : vector<1x32xf32>
      %293 = vector.extract_strided_slice %286 {offsets = [0, 32], sizes = [1, 32], strides = [1, 1]} : vector<1x128xf32> to vector<1x32xf32>
      %294 = arith.negf %293 : vector<1x32xf32>
      %295 = math.exp %294 : vector<1x32xf32>
      %cst_97 = arith.constant 1.000000e+00 : f32
      %296 = vector.broadcast %cst_97 : f32 to vector<1x32xf32>
      %297 = arith.addf %296, %295 : vector<1x32xf32>
      %298 = arith.divf %296, %297 : vector<1x32xf32>
      %299 = vector.extract_strided_slice %286 {offsets = [0, 64], sizes = [1, 32], strides = [1, 1]} : vector<1x128xf32> to vector<1x32xf32>
      %300 = math.tanh %299 : vector<1x32xf32>
      %301 = vector.extract_strided_slice %286 {offsets = [0, 96], sizes = [1, 32], strides = [1, 1]} : vector<1x128xf32> to vector<1x32xf32>
      %302 = arith.negf %301 : vector<1x32xf32>
      %303 = math.exp %302 : vector<1x32xf32>
      %cst_98 = arith.constant 1.000000e+00 : f32
      %304 = vector.broadcast %cst_98 : f32 to vector<1x32xf32>
      %305 = arith.addf %304, %303 : vector<1x32xf32>
      %306 = arith.divf %304, %305 : vector<1x32xf32>
      %307 = arith.mulf %298, %272 : vector<1x32xf32>
      %308 = arith.mulf %292, %300 : vector<1x32xf32>
      %309 = arith.addf %307, %308 : vector<1x32xf32>
      %310 = math.tanh %309 : vector<1x32xf32>
      %311 = arith.mulf %306, %310 : vector<1x32xf32>
      %312 = arith.truncf %311 : vector<1x32xf32> to vector<1x32xbf16>
      %313 = arith.index_cast %c7_i32 : i32 to index
      %c0_99 = arith.constant 0 : index
      %c0_100 = arith.constant 0 : index
      %314 = vector.load %arg10[%313, %c0_99, %c0_100] : memref<8x1x32xbf16, #tpu.memory_space<vmem>>, vector<1x1x32xbf16>
      %315 = vector.shape_cast %314 : vector<1x1x32xbf16> to vector<1x32xbf16>
      %316 = vector.shape_cast %312 : vector<1x32xbf16> to vector<1x1x32xbf16>
      tpu.vector_store %arg10[%313, %c0_99, %c0_100], %316 {strides = array<i32>} : memref<8x1x32xbf16, #tpu.memory_space<vmem>>, vector<1x1x32xbf16>,
      %c8_i32 = arith.constant 8 : i32
      %c0_101 = arith.constant 0 : index
      %c0_102 = arith.constant 0 : index
      %c0_103 = arith.constant 0 : index
      %317 = vector.load %arg10[%c0_101, %c0_102, %c0_103] : memref<8x1x32xbf16, #tpu.memory_space<vmem>>, vector<8x1x32xbf16>
      %318 = vector.shape_cast %317 : vector<8x1x32xbf16> to vector<8x32xbf16>
      %c0_104 = arith.constant 0 : index
      %c0_105 = arith.constant 0 : index
      %319 = vector.load %arg11[%c0_104, %c0_105] : memref<8x32xbf16, #tpu.memory_space<vmem>>, vector<8x32xbf16>
      tpu.vector_store %arg11[%c0_104, %c0_105], %318 {strides = array<i32>} : memref<8x32xbf16, #tpu.memory_space<vmem>>, vector<8x32xbf16>,
    } else {
    }
    %c0 = arith.constant 0 : index
    %c0_1 = arith.constant 0 : index
    %3 = vector.load %arg11[%c0, %c0_1] : memref<8x32xbf16, #tpu.memory_space<vmem>>, vector<8x32xbf16>
    %c0_2 = arith.constant 0 : index
    %c0_3 = arith.constant 0 : index
    %4 = vector.load %arg6[%c0_2, %c0_3] : memref<32x512xbf16, #tpu.memory_space<vmem>>, vector<32x512xbf16>
    %cst = arith.constant dense<0.000000e+00> : vector<8x512xf32>
    %5 = tpu.matmul %3, %4, %cst {dimension_numbers = #tpu.dot_dimension_numbers<[1], [0], [0], [1], [0, 0, 1, 1], [], []>} : vector<8x32xbf16>, vector<32x512xbf16>, vector<8x512xf32> -> vector<8x512xf32>
    %c0_4 = arith.constant 0 : index
    %c0_5 = arith.constant 0 : index
    %6 = vector.load %arg7[%c0_4, %c0_5] : memref<1x512xf32, #tpu.memory_space<vmem>>, vector<1x512xf32>
    %7 = vector.broadcast %6 : vector<1x512xf32> to vector<8x512xf32>
    %8 = arith.addf %5, %7 : vector<8x512xf32>
    %c0_6 = arith.constant 0 : index
    %c0_7 = arith.constant 0 : index
    %9 = vector.load %arg8[%c0_6, %c0_7] : memref<8x512xf32, #tpu.memory_space<vmem>>, vector<8x512xf32>
    tpu.vector_store %arg8[%c0_6, %c0_7], %8 {strides = array<i32>} : memref<8x512xf32, #tpu.memory_space<vmem>>, vector<8x512xf32>,
    return
  }
  func.func @transform_0(%arg0: i32, %arg1: i32) -> (i32, i32, i32) {
    %c0_i32 = arith.constant 0 : i32
    %c0_i32_0 = arith.constant 0 : i32
    %c0_i32_1 = arith.constant 0 : i32
    return %arg0, %c0_i32, %c0_i32_0 : i32, i32, i32
  }
  func.func @transform_1(%arg0: i32, %arg1: i32) -> (i32, i32) {
    %c0_i32 = arith.constant 0 : i32
    %c0_i32_0 = arith.constant 0 : i32
    %c0_i32_1 = arith.constant 0 : i32
    return %c0_i32, %c0_i32_0 : i32, i32
  }
  func.func @transform_2(%arg0: i32, %arg1: i32) -> (i32, i32) {
    %c0_i32 = arith.constant 0 : i32
    %c0_i32_0 = arith.constant 0 : i32
    %c0_i32_1 = arith.constant 0 : i32
    return %c0_i32, %c0_i32_0 : i32, i32
  }
  func.func @transform_3(%arg0: i32, %arg1: i32) -> (i32, i32) {
    %c0_i32 = arith.constant 0 : i32
    %c0_i32_0 = arith.constant 0 : i32
    %c0_i32_1 = arith.constant 0 : i32
    return %c0_i32, %c0_i32_0 : i32, i32
  }
  func.func @transform_4(%arg0: i32, %arg1: i32) -> (i32, i32) {
    %c0_i32 = arith.constant 0 : i32
    %c0_i32_0 = arith.constant 0 : i32
    return %c0_i32, %arg1 : i32, i32
  }
  func.func @transform_5(%arg0: i32, %arg1: i32) -> (i32, i32) {
    %c0_i32 = arith.constant 0 : i32
    %c0_i32_0 = arith.constant 0 : i32
    return %c0_i32, %arg1 : i32, i32
  }
  func.func @transform_6(%arg0: i32, %arg1: i32) -> (i32, i32) {
    %c0_i32 = arith.constant 0 : i32
    return %arg0, %arg1 : i32, i32
  }
}

</mosaic_0001>

<bundles_post_ra>
// kernel: decoder_forward.1
= control target key start
LH: loop header
LB: loop body
LE: loop exit
PB: predicated region body
PF: predicated region fallthrough
CT: control target
= control target key end

     0   :  { %11 = vsyncpa [#allocation6], 0  ;;  %s2121_s0 = inlined_call_operand.vmem [shape: f32[2,8,32], index: 0, kind: input, shape index: {}]   ;;  %s2122_s1 = inlined_call_operand.vmem [shape: bf16[32,128], index: 1, kind: input, shape index: {}]   ;;  %s2123_s2 = inlined_call_operand.vmem [shape: bf16[32,128], index: 2, kind: input, shape index: {}]   ;;  %s2124_s3 = inlined_call_operand.vmem [shape: f32[1,128], index: 3, kind: input, shape index: {}]   ;;  %s2125_s4 = inlined_call_operand.vmem [shape: bf16[32,512], index: 4, kind: input, shape index: {}]   ;;  %s2126_s5 = inlined_call_operand.vmem [shape: f32[1,512], index: 5, kind: input, shape index: {}]   ;;  %s2127_s6 = inlined_call_operand.hbm [shape: f32[16,512], index: 6, kind: output, shape index: {}]  }
   0x1   :  { %13 = vsyncpa [#allocation6 + $0x1], 0  ;;  %s1803_s21 = smov 0   ;;  %s1805_s22 = smov 0  }
   0x2   :  { %s1807_s23 = smov 0   ;;  %s1809_s24 = smov 0  }
   0x3   :  { %s1811_s25 = smov 0   ;;  %s1813_s26 = smov 0  }
   0x4 LB: > { %s1397_s27 = sadd.s32 4294967295, %s1763_s26   ;;  %s1398_s28 = sadd.s32 4294967294, %s1763_s26   ;;  %s1763_s26 = sphi %s1813_s26, %s19_s26   ;;  %s1759_s25 = sphi %s1811_s25, %s2136_s25   ;;  %s1755_s24 = sphi %s1809_s24, %s2135_s24   ;;  %s1751_s23 = sphi %s1807_s23, %s2134_s23   ;;  %s1747_s22 = sphi %s1805_s22, %s2133_s22   ;;  %s1743_s21 = sphi %s1803_s21, %s2132_s21  }
   0x5   : > { %s31_s29 = sadd.s32 1, %s1759_s25  ;;  %s181_s30 = sadd.s32 1, %s1751_s23 }
   0x6   : > { %p33_p0 = scmp.ge.s32.totalorder %s31_s29, 2  ;;  %p191_p1 = scmp.ne.s32.totalorder %s1751_s23, %s1747_s22 }
   0x7   : > { %p192_p2 = scmp.eq.s32.totalorder %s1397_s27, 1  ;;  %p197_p3 = scmp.ne.s32.totalorder %s1747_s22, %s1743_s21 }
   0x8   : > { %s2138_s29 = smov (%p33_p0, %s31_s29), 0  ;;  %p198_p5 = scmp.eq.s32.totalorder %s1398_s28, 1 }
   0x9   : > { %p1843_p4 = por %p192_p2, %p191_p1  ;;  %s176_s8 = ssub.s32 %s1759_s25, %s2138_s29 }
   0xa   : > { %p1403_p6 = scmp.ge.s32.totalorder %s1763_s26, 1  ;;  %p179_p7 = scmp.eq.s32.totalorder %s176_s8, 0 }
   0xb   : > { %p1850_p8 = por %p198_p5, %p197_p3  ;;  %p249_p9 = scmp.lt.s32.totalorder %s1763_s26, 3 }
   0xc   : > { %s1856_s10 = scalar_select %p179_p7, %s1751_s23, %s181_s30  }
   0xd   : > { %p250_p10 = pnand %p1403_p6, %p249_p9 }
   0xe   : > { %p287_p11 = scmp.lt.s32.totalorder (!%p250_p10), %s1755_s24, 1  ;;  %s1766_s12 = smov (!%p250_p10), 64  }
   0xf   : > { %253 = sbr.rel (%p250_p10) target bundleno = 4882 (0x1312), region = 44  ;;  %s1767_s13 = smov (!%p250_p10), 32  }
  0x10   : > { %s1561_s8 = sshll.u32 (!%p250_p10), %s1755_s24, 5  ;;  %s1705_s28 = scalar_lea.hbm (!%p250_p10), %s2127_s6, 64 }
  0x11   : > { %s1295_s15 = scalar_lea.hbm (!%p250_p10), %s2127_s6, %s1561_s8 }
  0x14   : > { %v1536_v0 = vld [vmem:[%s2122_s1 + $0x8] sm:$0xff]  ;;  %v1535_v2 = vld [vmem:[%s2122_s1] sm:$0xff]  ;;  %s288_s19 = scalar_select %p287_p11, %s1755_s24, 1  ;;  %vm330_vm0 = vcmask 261120   ;;  %v1765_v6 = vmov 0  }
  0x15   : > { %v1538_v1 = vld [vmem:[%s2123_s2 + $0x8] sm:$0xff]  ;;  %340 = vmatpush.bf16.msra.mxu0 %v1536_v0  ;;  %v1537_v3 = vld [vmem:[%s2123_s2] sm:$0xff] }
  0x16   : > { %396 = vmatpush.bf16.msra.mxu1 %v1538_v1  ;;  %s1405_s20 = sshll.u32 %s288_s19, 3  ;;  %v1620_v7 = vld [vmem:[%s2124_s3] ss:$0 sm:$0xff]  ;;  %v1540_v42 = vld [vmem:[%s2123_s2 + $0x8] sm:$0xff] }
  0x17   : > { %s290_s30 = scalar_lea.vmem %s2121_s0, %s1405_s20  ;;  %489 = vmatpush.bf16.msra.mxu2 %v1540_v42  ;;  %v1539_v43 = vld [vmem:[%s2123_s2] sm:$0xff]  ;;  %v1544_v42 = vld [vmem:[%s2123_s2 + $0x8] sm:$0xff]  ;;  %s284_s20 = sand.u32 1, %s1747_s22  }
  0x18   : > { %v308_v4 = vld [vmem:[%s290_s30] sm:$0xff]  ;;  %s1404_s30 = sshll.u32 %s284_s20, 5  ;;  %s1282_s24 = scalar_lea.sflag [#allocation6], %s284_s20 }
  0x19   : > { %341 = vmatpush.bf16.msra.mxu0 %v1535_v2  ;;  %v309_v5 = vpack.c.bf16 %v308_v4, %v308_v4  ;;  %s286_s16 = scalar_lea.vmem [#allocation5], %s1404_s30 }
  0x1a   : > { %397 = vmatpush.bf16.msra.mxu1 %v1537_v3  ;;  %s1297_s17 = sshll.u32 %s286_s16, 4  ;;  %s1298_s17 = int_to_ptr.vmem [resolvable:$true] %s1297_s17 }
  0x1b   : > { %490 = vmatpush.bf16.msra.mxu2 %v1539_v43  ;;  %v1543_v43 = vld [vmem:[%s2123_s2] sm:$0xff] }
  0x1c   : > { %1414 = vmatmul.msk.bf16.vlgmr.msra.gmra.mxu0 %vm330_vm0, %v309_v5 }
  0x1d   : > { %398 = vmatmul.bf16.vlgmr.msra.gmra.mxu1 %v1765_v6  ;;  %669 = vmatpush.bf16.msrb.mxu0 %v1544_v42 }
  0x21   : > { %670 = vmatpush.bf16.msrb.mxu0 %v1543_v43 }
  0x99   : > { %v343_v8 = vpop.f32.mrf.mxu0 }
  0x9a   : > { %v399_v9 = vpop.f32.mrf.mxu1  ;;  %v344_v10 = vadd.f32 %v1620_v7, %v343_v8 }
  0x9c   : > { %v348_v11 = vrot.slane %v344_v10, 1  ;;  %v349_v12 = vrot.slane %v344_v10, 2  ;;  %v350_v13 = vrot.slane %v344_v10, 3  ;;  %362 = vst [vmem:[#allocation2] sm:$0x1] %v344_v10  ;;  %v351_v14 = vrot.slane %v344_v10, 4 }
  0x9d   : > { %v352_v15 = vrot.slane %v344_v10, 5  ;;  %v353_v16 = vrot.slane %v344_v10, 6  ;;  %v354_v17 = vrot.slane %v344_v10, 7  ;;  %v1542_v10 = vld [vmem:[%s2123_s2 + $0x8] sm:$0xff] }
  0x9e   : > { %363 = vst [vmem:[#allocation2 + $0x1] sm:$0x1] %v348_v11  ;;  %579 = vmatpush.bf16.msra.mxu3 %v1542_v10  ;;  %v1541_v11 = vld [vmem:[%s2123_s2] sm:$0xff] }
  0x9f   : > { %364 = vst [vmem:[#allocation2 + $0x2] sm:$0x1] %v349_v12 }
  0xa0   : > { %365 = vst [vmem:[#allocation2 + $0x3] sm:$0x1] %v350_v13 }
  0xa1   : > { %366 = vst [vmem:[#allocation2 + $0x4] sm:$0x1] %v351_v14  ;;  %v345_v18 = vpop.f32.mrf.mxu0 }
  0xa2   : > { %v401_v19 = vpop.f32.mrf.mxu1  ;;  %367 = vst [vmem:[#allocation2 + $0x5] sm:$0x1] %v352_v15  ;;  %580 = vmatpush.bf16.msra.mxu3 %v1541_v11  ;;  %v1546_v11 = vld [vmem:[%s2123_s2 + $0x8] sm:$0xff] }
  0xa3   : > { %368 = vst [vmem:[#allocation2 + $0x6] sm:$0x1] %v353_v16  ;;  %v370_v20 = vld [vmem:[#allocation2] sm:$0x1]  ;;  %759 = vmatpush.bf16.msrb.mxu1 %v1546_v11 }
  0xa4   : > { %369 = vst [vmem:[#allocation2 + $0x7] sm:$0x1] %v354_v17  ;;  %v403_v21 = vadd.f32 %v399_v9, %v370_v20 }
  0xa5   : > { %v459_v50 = vld [vmem:[#allocation2 + $0x1] sm:$0x1] }
  0xa6   : > { %1621 = vtanh.f32 %v403_v21  ;;  %v1423_v23 = vmul.f32 -1.442695, %v403_v21  ;;  %v549_v18 = vld [vmem:[#allocation2 + $0x2] sm:$0x1] }
  0xa8   : > { %1623 = vpow2.f32 %v1423_v23 }
  0xac   : > { %v1622_v22 = vpop.eup %1621 }
  0xad   : > { %426 = vrot.lane.b32.xlu0 %v1622_v22, %s1766_s12 }
  0xae   : > { %v1624_v24 = vpop.eup %1623 }
  0xaf   : > { %v407_v25 = vadd.f32 1.0, %v1624_v24 }
  0xb1   : > { %1625 = vrcp.f32 %v407_v25  ;;  %v419_v31 = vand.u32 2147483648, %v407_v25  ;;  %vm413_vm2 = vweird.f32 %v407_v25  ;;  %v417_v32 = vand.u32 2147483647, %v407_v25 }
  0xb3   : > { %v420_v34 = vor.u32 1.1754944e-38, %v419_v31  ;;  %vm418_vm4 = vcmp.eq.f32.partialorder %v417_v32, 8.507059e+37 }
  0xb7   : > { %v1626_v26 = vpop.eup %1625 }
  0xb8   : > { %v409_v27 = vmul.f32 %v1626_v26, %v407_v25  ;;  %vm414_vm1 = vweird.f32 %v1626_v26 }
  0xb9   : > { %vm415_vm3 = vmor %vm413_vm2, %vm414_vm1 }
  0xba   : > { %v410_v28 = vsub.f32 1.0, %v409_v27 }
  0xbc   : > { %v411_v29 = vmul.f32 %v1626_v26, %v410_v28 }
  0xbe   : > { %v412_v30 = vadd.f32 %v1626_v26, %v411_v29 }
  0xc0   : > { %v416_v33 = vsel %vm415_vm3, %v1626_v26, %v412_v30 }
  0xc1   : > { %v421_v36 = vsel %vm418_vm4, %v420_v34, %v416_v33 }
  0xc2   : > { %v424_v38 = vmul.f32 0.0, %v421_v36 }
 0x11f   : > { %v427_v35 = vpop.permute.xlu0 %426 }
 0x120   : > { %v429_v37 = vmul.f32 %v427_v35, %v421_v36 }
 0x122   : > { %431 = vrot.lane.b32.xlu0 %v429_v37, %s1767_s13 }
 0x194   : > { %v432_v39 = vpop.permute.xlu0 %431 }
 0x195   : > { %v434_v40 = vadd.f32 %v432_v39, %v424_v38 }
 0x197   : > { %1627 = vtanh.f32 %v434_v40 }
 0x19d   : > { %v1628_v41 = vpop.eup %1627 }
 0x19e   : > { %437 = vrot.lane.b32.xlu1 %v1628_v41, %s1766_s12 }
 0x210   : > { %v438_v44 = vpop.permute.xlu1 %437 }
 0x211   : > { %v440_v45 = vmul.f32 %v438_v44, %v421_v36 }
 0x213   : > { %v1888_v46 = vpack.c.bf16 %v440_v45, %v440_v45 }
 0x215   : > { %v464_v47 = vunpack.c.l.b16 %v1888_v46 }
 0x217   : > { %v465_v48 = vpack.c.b16 %v464_v47, %v464_v47 }
 0x219   : > { %466 = vrot.lane.b32.xlu1 %v465_v48, %s1767_s13 }
 0x28b   : > { %v467_v49 = vpop.permute.xlu1 %466 }
 0x28c   : > { %1432 = vmatmul.msk.bf16.vlgmr.msra.gmra.mxu2 %vm330_vm0, %v467_v49 }
 0x30f   : > { %v492_v51 = vpop.f32.mrf.mxu2 }
 0x310   : > { %v496_v52 = vadd.f32 %v492_v51, %v459_v50  ;;  %v639_v51 = vld [vmem:[#allocation2 + $0x3] sm:$0x1] }
 0x312   : > { %1629 = vtanh.f32 %v496_v52  ;;  %v1433_v55 = vmul.f32 -1.442695, %v496_v52 }
 0x314   : > { %1631 = vpow2.f32 %v1433_v55 }
 0x317   : > { %v494_v53 = vpop.f32.mrf.mxu2 }
 0x318   : > { %v1630_v54 = vpop.eup %1629 }
 0x319   : > { %519 = vrot.lane.b32.xlu2 %v1630_v54, %s1766_s12 }
 0x31a   : > { %v1632_v56 = vpop.eup %1631 }
 0x31b   : > { %v500_v57 = vadd.f32 1.0, %v1632_v56 }
 0x31d   : > { %1633 = vrcp.f32 %v500_v57  ;;  %v512_v63 = vand.u32 2147483648, %v500_v57  ;;  %vm506_vm6 = vweird.f32 %v500_v57  ;;  %v510_v0 = vand.u32 2147483647, %v500_v57 }
 0x31f   : > { %v513_v2 = vor.u32 1.1754944e-38, %v512_v63  ;;  %vm511_vm8 = vcmp.eq.f32.partialorder %v510_v0, 8.507059e+37 }
 0x323   : > { %v1634_v58 = vpop.eup %1633 }
 0x324   : > { %v502_v59 = vmul.f32 %v1634_v58, %v500_v57  ;;  %vm507_vm5 = vweird.f32 %v1634_v58 }
 0x325   : > { %vm508_vm7 = vmor %vm506_vm6, %vm507_vm5 }
 0x326   : > { %v503_v60 = vsub.f32 1.0, %v502_v59 }
 0x328   : > { %v504_v61 = vmul.f32 %v1634_v58, %v503_v60 }
 0x32a   : > { %v505_v62 = vadd.f32 %v1634_v58, %v504_v61 }
 0x32c   : > { %v509_v1 = vsel %vm508_vm7, %v1634_v58, %v505_v62 }
 0x32d   : > { %v514_v4 = vsel %vm511_vm8, %v513_v2, %v509_v1 }
 0x32e   : > { %v517_v6 = vmul.f32 %v514_v4, %v434_v40 }
 0x373   : > { %v520_v3 = vpop.permute.xlu2 %519 }
 0x374   : > { %v522_v5 = vmul.f32 %v520_v3, %v514_v4 }
 0x376   : > { %524 = vrot.lane.b32.xlu2 %v522_v5, %s1767_s13 }
 0x3d0   : > { %v525_v7 = vpop.permute.xlu2 %524 }
 0x3d1   : > { %v527_v8 = vadd.f32 %v525_v7, %v517_v6 }
 0x3d3   : > { %1635 = vtanh.f32 %v527_v8 }
 0x3d9   : > { %v1636_v9 = vpop.eup %1635 }
 0x3da   : > { %530 = vrot.lane.b32.xlu0 %v1636_v9, %s1766_s12 }
 0x44c   : > { %v531_v12 = vpop.permute.xlu0 %530 }
 0x44d   : > { %v533_v13 = vmul.f32 %v531_v12, %v514_v4  ;;  %v1545_v12 = vld [vmem:[%s2123_s2] sm:$0xff] }
 0x44e   : > { %760 = vmatpush.bf16.msrb.mxu1 %v1545_v12 }
 0x44f   : > { %v1902_v14 = vpack.c.bf16 %v533_v13, %v533_v13 }
 0x451   : > { %v554_v15 = vunpack.c.l.b16 %v1902_v14 }
 0x453   : > { %v555_v16 = vpack.c.b16 %v554_v15, %v554_v15 }
 0x455   : > { %556 = vrot.lane.b32.xlu1 %v555_v16, %s1767_s13 }
 0x4c7   : > { %v557_v17 = vpop.permute.xlu1 %556 }
 0x4c8   : > { %1442 = vmatmul.msk.bf16.vlgmr.msra.gmra.mxu3 %vm330_vm0, %v557_v17 }
 0x54b   : > { %v582_v19 = vpop.f32.mrf.mxu3 }
 0x54c   : > { %v586_v20 = vadd.f32 %v582_v19, %v549_v18 }
 0x54e   : > { %1637 = vtanh.f32 %v586_v20  ;;  %v1443_v23 = vmul.f32 -1.442695, %v586_v20  ;;  %v729_v20 = vld [vmem:[#allocation2 + $0x4] sm:$0x1] }
 0x550   : > { %1639 = vpow2.f32 %v1443_v23 }
 0x553   : > { %v584_v21 = vpop.f32.mrf.mxu3 }
 0x554   : > { %v1638_v22 = vpop.eup %1637 }
 0x555   : > { %609 = vrot.lane.b32.xlu2 %v1638_v22, %s1766_s12 }
 0x556   : > { %v1640_v24 = vpop.eup %1639 }
 0x557   : > { %v590_v25 = vadd.f32 1.0, %v1640_v24 }
 0x559   : > { %1641 = vrcp.f32 %v590_v25  ;;  %v602_v31 = vand.u32 2147483648, %v590_v25  ;;  %vm596_vm10 = vweird.f32 %v590_v25  ;;  %v600_v32 = vand.u32 2147483647, %v590_v25 }
 0x55b   : > { %v603_v34 = vor.u32 1.1754944e-38, %v602_v31  ;;  %vm601_vm12 = vcmp.eq.f32.partialorder %v600_v32, 8.507059e+37 }
 0x55f   : > { %v1642_v26 = vpop.eup %1641 }
 0x560   : > { %v592_v27 = vmul.f32 %v1642_v26, %v590_v25  ;;  %vm597_vm9 = vweird.f32 %v1642_v26 }
 0x561   : > { %vm598_vm11 = vmor %vm596_vm10, %vm597_vm9 }
 0x562   : > { %v593_v28 = vsub.f32 1.0, %v592_v27 }
 0x564   : > { %v594_v29 = vmul.f32 %v1642_v26, %v593_v28 }
 0x566   : > { %v595_v30 = vadd.f32 %v1642_v26, %v594_v29 }
 0x568   : > { %v599_v33 = vsel %vm598_vm11, %v1642_v26, %v595_v30 }
 0x569   : > { %v604_v36 = vsel %vm601_vm12, %v603_v34, %v599_v33 }
 0x56a   : > { %v607_v38 = vmul.f32 %v604_v36, %v527_v8 }
 0x5af   : > { %v610_v35 = vpop.permute.xlu2 %609 }
 0x5b0   : > { %v612_v37 = vmul.f32 %v610_v35, %v604_v36 }
 0x5b2   : > { %614 = vrot.lane.b32.xlu0 %v612_v37, %s1767_s13 }
 0x624   : > { %v615_v39 = vpop.permute.xlu0 %614 }
 0x625   : > { %v617_v40 = vadd.f32 %v615_v39, %v607_v38 }
 0x627   : > { %1643 = vtanh.f32 %v617_v40 }
 0x62d   : > { %v1644_v41 = vpop.eup %1643 }
 0x62e   : > { %620 = vrot.lane.b32.xlu1 %v1644_v41, %s1766_s12 }
 0x6a0   : > { %v621_v44 = vpop.permute.xlu1 %620 }
 0x6a1   : > { %v623_v45 = vmul.f32 %v621_v44, %v604_v36  ;;  %v1548_v44 = vld [vmem:[%s2123_s2 + $0x8] sm:$0xff] }
 0x6a2   : > { %849 = vmatpush.bf16.msrb.mxu2 %v1548_v44 }
 0x6a3   : > { %v1916_v47 = vpack.c.bf16 %v623_v45, %v623_v45  ;;  %v1547_v45 = vld [vmem:[%s2123_s2] sm:$0xff] }
 0x6a5   : > { %v644_v48 = vunpack.c.l.b16 %v1916_v47 }
 0x6a6   : > { %850 = vmatpush.bf16.msrb.mxu2 %v1547_v45 }
 0x6a7   : > { %v645_v49 = vpack.c.b16 %v644_v48, %v644_v48 }
 0x6a9   : > { %646 = vrot.lane.b32.xlu2 %v645_v49, %s1767_s13 }
 0x703   : > { %v647_v50 = vpop.permute.xlu2 %646 }
 0x704   : > { %1452 = vmatmul.msk.bf16.vlgmr.msrb.gmra.mxu0 %vm330_vm0, %v647_v50 }
 0x781   : > { %v672_v52 = vpop.f32.mrf.mxu0 }
 0x782   : > { %v676_v53 = vadd.f32 %v672_v52, %v639_v51 }
 0x784   : > { %1645 = vtanh.f32 %v676_v53  ;;  %v1453_v56 = vmul.f32 -1.442695, %v676_v53 }
 0x786   : > { %1647 = vpow2.f32 %v1453_v56 }
 0x789   : > { %v674_v54 = vpop.f32.mrf.mxu0 }
 0x78a   : > { %v1646_v55 = vpop.eup %1645  ;;  %v819_v54 = vld [vmem:[#allocation2 + $0x5] sm:$0x1] }
 0x78b   : > { %699 = vrot.lane.b32.xlu0 %v1646_v55, %s1766_s12 }
 0x78c   : > { %v1648_v57 = vpop.eup %1647 }
 0x78d   : > { %v680_v58 = vadd.f32 1.0, %v1648_v57 }
 0x78f   : > { %1649 = vrcp.f32 %v680_v58  ;;  %v692_v0 = vand.u32 2147483648, %v680_v58  ;;  %vm686_vm14 = vweird.f32 %v680_v58  ;;  %v690_v1 = vand.u32 2147483647, %v680_v58 }
 0x791   : > { %v693_v3 = vor.u32 1.1754944e-38, %v692_v0  ;;  %vm691_vm1 = vcmp.eq.f32.partialorder %v690_v1, 8.507059e+37 }
 0x795   : > { %v1650_v59 = vpop.eup %1649 }
 0x796   : > { %v682_v60 = vmul.f32 %v1650_v59, %v680_v58  ;;  %vm687_vm13 = vweird.f32 %v1650_v59 }
 0x797   : > { %vm688_vm15 = vmor %vm686_vm14, %vm687_vm13  ;;  %vm444_vm14 = vcmask 1040384  }
 0x798   : > { %v683_v61 = vsub.f32 1.0, %v682_v60 }
 0x79a   : > { %v684_v62 = vmul.f32 %v1650_v59, %v683_v61 }
 0x79c   : > { %v685_v63 = vadd.f32 %v1650_v59, %v684_v62 }
 0x79e   : > { %v689_v2 = vsel %vm688_vm15, %v1650_v59, %v685_v63 }
 0x79f   : > { %v694_v5 = vsel %vm691_vm1, %v693_v3, %v689_v2 }
 0x7a0   : > { %v697_v7 = vmul.f32 %v694_v5, %v617_v40 }
 0x7fd   : > { %v700_v4 = vpop.permute.xlu0 %699 }
 0x7fe   : > { %v702_v6 = vmul.f32 %v700_v4, %v694_v5 }
 0x800   : > { %704 = vrot.lane.b32.xlu1 %v702_v6, %s1767_s13 }
 0x872   : > { %v705_v8 = vpop.permute.xlu1 %704 }
 0x873   : > { %v707_v9 = vadd.f32 %v705_v8, %v697_v7 }
 0x875   : > { %1651 = vtanh.f32 %v707_v9 }
 0x87b   : > { %v1652_v10 = vpop.eup %1651 }
 0x87c   : > { %710 = vrot.lane.b32.xlu2 %v1652_v10, %s1766_s12 }
 0x8d6   : > { %v711_v13 = vpop.permute.xlu2 %710 }
 0x8d7   : > { %v713_v15 = vmul.f32 %v711_v13, %v694_v5 }
 0x8d9   : > { %v1930_v16 = vpack.c.bf16 %v713_v15, %v713_v15  ;;  %v1550_v15 = vld [vmem:[%s2123_s2 + $0x8] sm:$0xff] }
 0x8da   : > { %939 = vmatpush.bf16.msrb.mxu3 %v1550_v15 }
 0x8db   : > { %v734_v17 = vunpack.c.l.b16 %v1930_v16 }
 0x8dd   : > { %v735_v18 = vpack.c.b16 %v734_v17, %v734_v17  ;;  %v1549_v17 = vld [vmem:[%s2123_s2] sm:$0xff] }
 0x8de   : > { %940 = vmatpush.bf16.msrb.mxu3 %v1549_v17 }
 0x8df   : > { %736 = vrot.lane.b32.xlu0 %v735_v18, %s1767_s13 }
 0x951   : > { %v737_v19 = vpop.permute.xlu0 %736 }
 0x952   : > { %1462 = vmatmul.msk.bf16.vlgmr.msrb.gmra.mxu1 %vm330_vm0, %v737_v19 }
 0x9cf   : > { %v762_v21 = vpop.f32.mrf.mxu1 }
 0x9d0   : > { %v766_v22 = vadd.f32 %v762_v21, %v729_v20 }
 0x9d2   : > { %1653 = vtanh.f32 %v766_v22  ;;  %v1463_v25 = vmul.f32 -1.442695, %v766_v22 }
 0x9d4   : > { %1655 = vpow2.f32 %v1463_v25 }
 0x9d7   : > { %v764_v23 = vpop.f32.mrf.mxu1 }
 0x9d8   : > { %v1654_v24 = vpop.eup %1653 }
 0x9d9   : > { %789 = vrot.lane.b32.xlu1 %v1654_v24, %s1766_s12  ;;  %v909_v24 = vld [vmem:[#allocation2 + $0x6] sm:$0x1] }
 0x9da   : > { %v1656_v26 = vpop.eup %1655 }
 0x9db   : > { %v770_v27 = vadd.f32 1.0, %v1656_v26 }
 0x9dd   : > { %1657 = vrcp.f32 %v770_v27  ;;  %v782_v33 = vand.u32 2147483648, %v770_v27  ;;  %vm776_vm3 = vweird.f32 %v770_v27  ;;  %v780_v34 = vand.u32 2147483647, %v770_v27 }
 0x9df   : > { %v783_v36 = vor.u32 1.1754944e-38, %v782_v33  ;;  %vm781_vm5 = vcmp.eq.f32.partialorder %v780_v34, 8.507059e+37 }
 0x9e3   : > { %v1658_v28 = vpop.eup %1657 }
 0x9e4   : > { %v772_v29 = vmul.f32 %v1658_v28, %v770_v27  ;;  %vm777_vm2 = vweird.f32 %v1658_v28 }
 0x9e5   : > { %vm778_vm4 = vmor %vm776_vm3, %vm777_vm2 }
 0x9e6   : > { %v773_v30 = vsub.f32 1.0, %v772_v29 }
 0x9e8   : > { %v774_v31 = vmul.f32 %v1658_v28, %v773_v30 }
 0x9ea   : > { %v775_v32 = vadd.f32 %v1658_v28, %v774_v31 }
 0x9ec   : > { %v779_v35 = vsel %vm778_vm4, %v1658_v28, %v775_v32  ;;  %vm452_vm4 = vcmask 253952  }
 0x9ed   : > { %v784_v38 = vsel %vm781_vm5, %v783_v36, %v779_v35  ;;  %vm453_vm5 = vsmask.f32 256 }
 0x9ee   : > { %v787_v40 = vmul.f32 %v784_v38, %v707_v9 }
 0xa4b   : > { %v790_v37 = vpop.permute.xlu1 %789 }
 0xa4c   : > { %v792_v39 = vmul.f32 %v790_v37, %v784_v38 }
 0xa4e   : > { %794 = vrot.lane.b32.xlu2 %v792_v39, %s1767_s13 }
 0xaa8   : > { %v795_v41 = vpop.permute.xlu2 %794 }
 0xaa9   : > { %v797_v42 = vadd.f32 %v795_v41, %v787_v40 }
 0xaab   : > { %1659 = vtanh.f32 %v797_v42 }
 0xab1   : > { %v1660_v43 = vpop.eup %1659 }
 0xab2   : > { %800 = vrot.lane.b32.xlu0 %v1660_v43, %s1766_s12 }
 0xb24   : > { %v801_v48 = vpop.permute.xlu0 %800 }
 0xb25   : > { %v803_v49 = vmul.f32 %v801_v48, %v784_v38 }
 0xb27   : > { %v1944_v50 = vpack.c.bf16 %v803_v49, %v803_v49 }
 0xb29   : > { %v824_v51 = vunpack.c.l.b16 %v1944_v50 }
 0xb2b   : > { %v825_v52 = vpack.c.b16 %v824_v51, %v824_v51  ;;  %v1552_v51 = vld [vmem:[%s2123_s2 + $0x8] sm:$0xff] }
 0xb2c   : > { %1029 = vmatpush.bf16.msra.mxu0 %v1552_v51 }
 0xb2d   : > { %826 = vrot.lane.b32.xlu1 %v825_v52, %s1767_s13  ;;  %v1551_v52 = vld [vmem:[%s2123_s2] sm:$0xff] }
 0xb30   : > { %1030 = vmatpush.bf16.msra.mxu0 %v1551_v52 }
 0xb9f   : > { %v827_v53 = vpop.permute.xlu1 %826 }
 0xba0   : > { %1472 = vmatmul.msk.bf16.vlgmr.msrb.gmra.mxu2 %vm330_vm0, %v827_v53 }
 0xc23   : > { %v852_v55 = vpop.f32.mrf.mxu2 }
 0xc24   : > { %v856_v56 = vadd.f32 %v852_v55, %v819_v54 }
 0xc26   : > { %1661 = vtanh.f32 %v856_v56  ;;  %v1473_v59 = vmul.f32 -1.442695, %v856_v56 }
 0xc28   : > { %1663 = vpow2.f32 %v1473_v59  ;;  %v999_v59 = vld [vmem:[#allocation2 + $0x7] sm:$0x1] }
 0xc2b   : > { %v854_v57 = vpop.f32.mrf.mxu2 }
 0xc2c   : > { %v1662_v58 = vpop.eup %1661 }
 0xc2d   : > { %879 = vrot.lane.b32.xlu2 %v1662_v58, %s1766_s12 }
 0xc2e   : > { %v1664_v60 = vpop.eup %1663 }
 0xc2f   : > { %v860_v61 = vadd.f32 1.0, %v1664_v60 }
 0xc31   : > { %1665 = vrcp.f32 %v860_v61  ;;  %v872_v3 = vand.u32 2147483648, %v860_v61  ;;  %vm866_vm7 = vweird.f32 %v860_v61  ;;  %v870_v4 = vand.u32 2147483647, %v860_v61 }
 0xc33   : > { %v873_v6 = vor.u32 1.1754944e-38, %v872_v3  ;;  %vm871_vm9 = vcmp.eq.f32.partialorder %v870_v4, 8.507059e+37 }
 0xc37   : > { %v1666_v62 = vpop.eup %1665 }
 0xc38   : > { %v862_v63 = vmul.f32 %v1666_v62, %v860_v61  ;;  %vm867_vm6 = vweird.f32 %v1666_v62 }
 0xc39   : > { %vm868_vm8 = vmor %vm866_vm7, %vm867_vm6  ;;  %vm1138_vm7 = vcmask 1041409  }
 0xc3a   : > { %v863_v0 = vsub.f32 1.0, %v862_v63  ;;  %vm1990_vm6 = vmand %vm452_vm4, %vm453_vm5 }
 0xc3c   : > { %v864_v1 = vmul.f32 %v1666_v62, %v863_v0  ;;  %v443_v0 = vrot.slane %v1888_v46, 3 }
 0xc3e   : > { %v865_v2 = vadd.f32 %v1666_v62, %v864_v1  ;;  %v447_v1 = vsel %vm444_vm14, %v1888_v46, %v443_v0 }
 0xc40   : > { %v869_v5 = vsel %vm868_vm8, %v1666_v62, %v865_v2  ;;  %v716_v2 = vrot.slane %v1930_v16, 3  ;;  %vm1141_vm8 = vcmask 1042434  }
 0xc41   : > { %v874_v8 = vsel %vm871_vm9, %v873_v6, %v869_v5  ;;  %vm1144_vm9 = vcmask 1043459  }
 0xc42   : > { %v877_v10 = vmul.f32 %v874_v8, %v797_v42  ;;  %v719_v3 = vsel %vm444_vm14, %v1930_v16, %v716_v2 }
 0xc87   : > { %v880_v7 = vpop.permute.xlu2 %879 }
 0xc88   : > { %v882_v9 = vmul.f32 %v880_v7, %v874_v8 }
 0xc8a   : > { %884 = vrot.lane.b32.xlu0 %v882_v9, %s1767_s13 }
 0xcfc   : > { %v885_v11 = vpop.permute.xlu0 %884 }
 0xcfd   : > { %v887_v12 = vadd.f32 %v885_v11, %v877_v10 }
 0xcff   : > { %1667 = vtanh.f32 %v887_v12 }
 0xd05   : > { %v1668_v13 = vpop.eup %1667 }
 0xd06   : > { %890 = vrot.lane.b32.xlu1 %v1668_v13, %s1766_s12 }
 0xd78   : > { %v891_v18 = vpop.permute.xlu1 %890 }
 0xd79   : > { %v893_v19 = vmul.f32 %v891_v18, %v874_v8 }
 0xd7b   : > { %v1958_v20 = vpack.c.bf16 %v893_v19, %v893_v19 }
 0xd7d   : > { %v914_v21 = vunpack.c.l.b16 %v1958_v20  ;;  %v896_v51 = vrot.slane %v1958_v20, 3 }
 0xd7f   : > { %v915_v22 = vpack.c.b16 %v914_v21, %v914_v21 }
 0xd81   : > { %916 = vrot.lane.b32.xlu2 %v915_v22, %s1767_s13  ;;  %v536_v22 = vrot.slane %v1902_v14, 3 }
 0xddb   : > { %v917_v23 = vpop.permute.xlu2 %916 }
 0xddc   : > { %1482 = vmatmul.msk.bf16.vlgmr.msrb.gmra.mxu3 %vm330_vm0, %v917_v23 }
 0xe5f   : > { %v942_v25 = vpop.f32.mrf.mxu3 }
 0xe60   : > { %v946_v26 = vadd.f32 %v942_v25, %v909_v24  ;;  %v455_v24 = vld [vmem:[#allocation3] sm:$0x1] }
 0xe62   : > { %1669 = vtanh.f32 %v946_v26  ;;  %v1483_v29 = vmul.f32 -1.442695, %v946_v26 }
 0xe64   : > { %1671 = vpow2.f32 %v1483_v29  ;;  %v725_v29 = vld [vmem:[#allocation3 + $0x3] sm:$0x1] }
 0xe67   : > { %v944_v27 = vpop.f32.mrf.mxu3 }
 0xe68   : > { %v1670_v28 = vpop.eup %1669  ;;  %v539_v27 = vsel %vm444_vm14, %v1902_v14, %v536_v22  ;;  %v1557_v22 = vld [vmem:[%s2125_s4 + $0x24] sm:$0xf] }
 0xe69   : > { %969 = vrot.lane.b32.xlu0 %v1670_v28, %s1766_s12  ;;  %v806_v28 = vrot.slane %v1944_v50, 3 }
 0xe6a   : > { %v1672_v30 = vpop.eup %1671 }
 0xe6b   : > { %v950_v31 = vadd.f32 1.0, %v1672_v30 }
 0xe6d   : > { %1673 = vrcp.f32 %v950_v31  ;;  %v962_v37 = vand.u32 2147483648, %v950_v31  ;;  %vm956_vm11 = vweird.f32 %v950_v31  ;;  %v960_v38 = vand.u32 2147483647, %v950_v31 }
 0xe6f   : > { %v963_v40 = vor.u32 1.1754944e-38, %v962_v37  ;;  %vm961_vm13 = vcmp.eq.f32.partialorder %v960_v38, 8.507059e+37 }
 0xe73   : > { %v1674_v32 = vpop.eup %1673 }
 0xe74   : > { %v952_v33 = vmul.f32 %v1674_v32, %v950_v31  ;;  %vm957_vm10 = vweird.f32 %v1674_v32 }
 0xe75   : > { %vm958_vm12 = vmor %vm956_vm11, %vm957_vm10  ;;  %vm1147_vm10 = vcmask 1044484   ;;  %vm1150_vm11 = vcmask 1045509  }
 0xe76   : > { %v953_v34 = vsub.f32 1.0, %v952_v33  ;;  %v809_v33 = vsel %vm444_vm14, %v1944_v50, %v806_v28  ;;  %v1512_v28 = vld [vmem:[%s2125_s4 + $0x20] sm:$0xf] }
 0xe78   : > { %v954_v35 = vmul.f32 %v1674_v32, %v953_v34  ;;  %v995_v34 = vld [vmem:[#allocation3 + $0x6] sm:$0x1] }
 0xe7a   : > { %v955_v36 = vadd.f32 %v1674_v32, %v954_v35 }
 0xe7c   : > { %v959_v39 = vsel %vm958_vm12, %v1674_v32, %v955_v36  ;;  %vm1153_vm12 = vcmask 1046534  }
 0xe7d   : > { %v964_v42 = vsel %vm961_vm13, %v963_v40, %v959_v39  ;;  %v545_v39 = vld [vmem:[#allocation3 + $0x1] sm:$0x1]  ;;  %vm1156_vm13 = vcmask 1047559  }
 0xe7e   : > { %v967_v44 = vmul.f32 %v964_v42, %v887_v12 }
 0xedb   : > { %v970_v41 = vpop.permute.xlu0 %969 }
 0xedc   : > { %v972_v43 = vmul.f32 %v970_v41, %v964_v42 }
 0xede   : > { %974 = vrot.lane.b32.xlu1 %v972_v43, %s1767_s13  ;;  %v815_v43 = vld [vmem:[#allocation3 + $0x4] sm:$0x1] }
 0xf50   : > { %v975_v45 = vpop.permute.xlu1 %974 }
 0xf51   : > { %v1965_v48 = vadd.f32 %v975_v45, %v967_v44 }
 0xf53   : > { %1675 = vtanh.f32 %v1965_v48 }
 0xf59   : > { %v1676_v49 = vpop.eup %1675 }
 0xf5a   : > { %980 = vrot.lane.b32.xlu2 %v1676_v49, %s1766_s12 }
 0xfb4   : > { %v981_v53 = vpop.permute.xlu2 %980 }
 0xfb5   : > { %v983_v54 = vmul.f32 %v981_v53, %v964_v42  ;;  %v626_v42 = vrot.slane %v1916_v47, 3 }
 0xfb7   : > { %v984_v55 = vpack.c.bf16 %v983_v54, %v983_v54  ;;  %v629_v49 = vsel %vm444_vm14, %v1916_v47, %v626_v42  ;;  %v899_v54 = vsel %vm444_vm14, %v1958_v20, %v896_v51 }
 0xfb9   : > { %v1004_v56 = vunpack.c.l.b16 %v984_v55  ;;  %v986_v4 = vrot.slane %v984_v55, 3 }
 0xfbb   : > { %v1005_v57 = vpack.c.b16 %v1004_v56, %v1004_v56  ;;  %v989_v5 = vsel %vm444_vm14, %v984_v55, %v986_v4 }
 0xfbd   : > { %1006 = vrot.lane.b32.xlu0 %v1005_v57, %s1767_s13 }
0x102f   : > { %v1007_v58 = vpop.permute.xlu0 %1006 }
0x1030   : > { %1492 = vmatmul.msk.bf16.vlgmr.msra.gmra.mxu0 %vm330_vm0, %v1007_v58 }
0x10ad   : > { %v1032_v60 = vpop.f32.mrf.mxu0 }
0x10ae   : > { %v1036_v61 = vadd.f32 %v1032_v60, %v999_v59  ;;  %v635_v59 = vld [vmem:[#allocation3 + $0x2] sm:$0x1] }
0x10b0   : > { %1677 = vtanh.f32 %v1036_v61  ;;  %v1493_v6 = vmul.f32 -1.442695, %v1036_v61 }
0x10b2   : > { %1679 = vpow2.f32 %v1493_v6 }
0x10b5   : > { %v1034_v62 = vpop.f32.mrf.mxu0 }
0x10b6   : > { %v1678_v63 = vpop.eup %1677  ;;  %v905_v62 = vld [vmem:[#allocation3 + $0x5] sm:$0x1] }
0x10b7   : > { %1059 = vrot.lane.b32.xlu1 %v1678_v63, %s1766_s12 }
0x10b8   : > { %v1680_v7 = vpop.eup %1679 }
0x10b9   : > { %v1040_v8 = vadd.f32 1.0, %v1680_v7 }
0x10bb   : > { %1681 = vrcp.f32 %v1040_v8  ;;  %v1052_v13 = vand.u32 2147483648, %v1040_v8  ;;  %vm1046_vm1 = vweird.f32 %v1040_v8  ;;  %v1050_v16 = vand.u32 2147483647, %v1040_v8 }
0x10bd   : > { %v1053_v17 = vor.u32 1.1754944e-38, %v1052_v13  ;;  %vm1051_vm3 = vcmp.eq.f32.partialorder %v1050_v16, 8.507059e+37 }
0x10bf   : > { %449 = vrot.lane.b32.xlu1 %v447_v1, %s1767_s13 }
0x10c1   : > { %v1682_v46 = vpop.eup %1681 }
0x10c2   : > { %v1042_v9 = vmul.f32 %v1682_v46, %v1040_v8  ;;  %vm1047_vm15 = vweird.f32 %v1682_v46 }
0x10c3   : > { %vm1048_vm2 = vmor %vm1046_vm1, %vm1047_vm15 }
0x10c4   : > { %v1043_v10 = vsub.f32 1.0, %v1042_v9 }
0x10c6   : > { %v1044_v11 = vmul.f32 %v1682_v46, %v1043_v10 }
0x10c7   : > { %721 = vrot.lane.b32.xlu1 %v719_v3, %s1767_s13 }
0x10c8   : > { %v1045_v12 = vadd.f32 %v1682_v46, %v1044_v11 }
0x10ca   : > { %v1049_v15 = vsel %vm1048_vm2, %v1682_v46, %v1045_v12 }
0x10cb   : > { %v1054_v19 = vsel %vm1051_vm3, %v1053_v17, %v1049_v15 }
0x10cc   : > { %v1057_v36 = vmul.f32 %v1054_v19, %v1965_v48 }
0x10cf   : > { %991 = vrot.lane.b32.xlu1 %v989_v5, %s1767_s13 }
0x1129   : > { %v1060_v18 = vpop.permute.xlu1 %1059 }
0x112a   : > { %v1062_v21 = vmul.f32 %v1060_v18, %v1054_v19 }
0x112c   : > { %1064 = vrot.lane.b32.xlu2 %v1062_v21, %s1767_s13 }
0x1131   : > { %v450_v25 = vpop.permute.xlu1 %449 }
0x1132   : > { %v456_v26 = vsel %vm1990_vm6, %v450_v25, %v455_v24  ;;  %v1514_v24 = vld [vmem:[%s2125_s4 + $0x30] sm:$0xf0]  ;;  %v1520_v25 = vld [vmem:[%s2125_s4 + $0x28] sm:$0xf] }
0x1133   : > { %457 = vst [vmem:[#allocation3] sm:$0x1] %v456_v26  ;;  %v1517_v26 = vor.u32 %v1557_v22, %v1514_v24 }
0x1134   : > { %541 = vrot.lane.b32.xlu2 %v539_v27, %s1767_s13  ;;  %v1560_v27 = vld [vmem:[%s2125_s4 + $0x34] sm:$0xf0] }
0x1135   : > { %1244 = vmatpush.bf16.msra.mxu2 %v1517_v26 }
0x1139   : > { %v722_v30 = vpop.permute.xlu1 %721 }
0x113a   : > { %v1088_v31 = vld [vmem:[#allocation3] sm:$0x1]  ;;  %v726_v32 = vsel %vm1990_vm6, %v722_v30, %v725_v29  ;;  %v1521_v30 = vor.u32 %v1560_v27, %v1520_v25 }
0x113b   : > { %1097 = vst [vmem:[#allocation1] ss:$4 sm:$0xff] %v1088_v31  ;;  %v1559_v29 = vld [vmem:[%s2125_s4 + $0x2c] sm:$0xf0] }
0x113c   : > { %727 = vst [vmem:[#allocation3 + $0x3] sm:$0x1] %v726_v32  ;;  %811 = vrot.lane.b32.xlu2 %v809_v33, %s1767_s13  ;;  %v1513_v31 = vor.u32 %v1559_v29, %v1512_v28  ;;  %v1558_v32 = vld [vmem:[%s2125_s4 + $0x2c] sm:$0xf]  ;;  %v1522_v33 = vld [vmem:[%s2125_s4 + $0x38] sm:$0xf0]  ;;  %1257 = vmatpush.bf16.msra.mxu3 %v1521_v30 }
0x113e   : > { %1231 = vmatpush.bf16.msra.mxu1 %v1513_v31 }
0x1141   : > { %v992_v35 = vpop.permute.xlu1 %991 }
0x1142   : > { %v996_v14 = vsel %vm1990_vm6, %v992_v35, %v995_v34  ;;  %v1098_v20 = vld [vmem:[#allocation1] sm:$0xf]  ;;  %v1553_v34 = vld [vmem:[%s2125_s4 + $0x4] sm:$0xf]  ;;  %v1525_v35 = vor.u32 %v1558_v32, %v1522_v33 }
0x1143   : > { %997 = vst [vmem:[#allocation3 + $0x6] sm:$0x1] %v996_v14  ;;  %v1091_v52 = vld [vmem:[#allocation3 + $0x3] sm:$0x1]  ;;  %v1129_v9 = vunpack.c.l.b16 %v1098_v20  ;;  %v1498_v14 = vld [vmem:[%s2125_s4 + $0x10] sm:$0xf0] }
0x1144   : > { %1270 = vmatpush.bf16.msrb.mxu0 %v1525_v35  ;;  %v1171_v20 = vld [vmem:[%s2126_s5] sm:$0xf] }
0x114a   : > { %v1094_v11 = vld [vmem:[#allocation3 + $0x6] sm:$0x1] }
0x1186   : > { %v1065_v37 = vpop.permute.xlu2 %1064 }
0x1187   : > { %v1067_v38 = vadd.f32 %v1065_v37, %v1057_v36  ;;  %v1504_v36 = vld [vmem:[%s2125_s4 + $0x8] sm:$0xf]  ;;  %v1556_v37 = vld [vmem:[%s2125_s4 + $0x14] sm:$0xf0] }
0x1189   : > { %1683 = vtanh.f32 %v1067_v38  ;;  %v1501_v38 = vor.u32 %v1553_v34, %v1498_v14 }
0x118b   : > { %1245 = vmatpush.bf16.msra.mxu2 %v1501_v38 }
0x118e   : > { %v542_v40 = vpop.permute.xlu2 %541 }
0x118f   : > { %v1684_v41 = vpop.eup %1683  ;;  %v546_v50 = vsel %vm1990_vm6, %v542_v40, %v545_v39  ;;  %v1505_v39 = vor.u32 %v1556_v37, %v1504_v36  ;;  %v1496_v40 = vld [vmem:[%s2125_s4] sm:$0xf] }
0x1190   : > { %547 = vst [vmem:[#allocation3 + $0x1] sm:$0x1] %v546_v50  ;;  %1070 = vrot.lane.b32.xlu0 %v1684_v41, %s1766_s12  ;;  %v1555_v41 = vld [vmem:[%s2125_s4 + $0xc] sm:$0xf0]  ;;  %v1554_v50 = vld [vmem:[%s2125_s4 + $0xc] sm:$0xf] }
0x1191   : > { %v1497_v42 = vor.u32 %v1555_v41, %v1496_v40  ;;  %1258 = vmatpush.bf16.msra.mxu3 %v1505_v39  ;;  %s1299_s12 = sshll.u32 %s1295_s15, 4  ;;  %s1300_s12 = int_to_ptr.hbm [resolvable:$true] %s1299_s12 }
0x1193   : > { %1232 = vmatpush.bf16.msra.mxu1 %v1497_v42 }
0x1196   : > { %v812_v44 = vpop.permute.xlu2 %811 }
0x1197   : > { %v1089_v45 = vld [vmem:[#allocation3 + $0x1] sm:$0x1]  ;;  %v816_v48 = vsel %vm1990_vm6, %v812_v44, %v815_v43  ;;  %v1506_v43 = vld [vmem:[%s2125_s4 + $0x18] sm:$0xf0] }
0x1198   : > { %1102 = vst [vmem:[#allocation1 + $0x20] ss:$4 sm:$0xff] %v1089_v45  ;;  %631 = vrot.lane.b32.xlu0 %v629_v49, %s1767_s13  ;;  %v1509_v44 = vor.u32 %v1554_v50, %v1506_v43  ;;  %v1085_v45 = vld [vmem:[#allocation3 + $0x7] sm:$0x1] }
0x1199   : > { %817 = vst [vmem:[#allocation3 + $0x4] sm:$0x1] %v816_v48 }
0x119a   : > { %1271 = vmatpush.bf16.msrb.mxu0 %v1509_v44 }
0x119f   : > { %v1103_v53 = vld [vmem:[#allocation1 + $0x20] sm:$0xf] }
0x11a0   : > { %1110 = vst [vmem:[#allocation1 + $0x20] ss:$4 sm:$0xff] %v1091_v52  ;;  %901 = vrot.lane.b32.xlu0 %v899_v54, %s1767_s13  ;;  %v1130_v2 = vunpack.c.l.b16 %v1103_v53  ;;  %v1092_v3 = vld [vmem:[#allocation3 + $0x4] sm:$0x1] }
0x11a2   : > { %v1137_v8 = vrot.slane %v1130_v2, 7 }
0x11a4   : > { %v1139_v13 = vsel %vm1138_vm7, %v1137_v8, %v1129_v9 }
0x11a7   : > { %v1111_v7 = vld [vmem:[#allocation1 + $0x20] sm:$0xf] }
0x11a8   : > { %v1132_v10 = vunpack.c.l.b16 %v1111_v7  ;;  %v1175_v7 = vperm.slane %v1171_v20, 2 }
0x11aa   : > { %v1143_v17 = vrot.slane %v1132_v10, 5 }
0x1202   : > { %v1071_v55 = vpop.permute.xlu0 %1070 }
0x1203   : > { %v1073_v56 = vmul.f32 %v1071_v55, %v1054_v19 }
0x1205   : > { %v1074_v57 = vpack.c.bf16 %v1073_v56, %v1073_v56 }
0x1207   : > { %v1076_v58 = vrot.slane %v1074_v57, 3 }
0x1209   : > { %v1079_v47 = vsel %vm444_vm14, %v1074_v57, %v1076_v58  ;;  %vm1160_vm14 = vcmask 257024  }
0x120a   : > { %v632_v60 = vpop.permute.xlu0 %631  ;;  %1081 = vrot.lane.b32.xlu2 %v1079_v47, %s1767_s13  ;;  %s1699_s13 = sshra.s32 %s1300_s12, 4  ;;  %s1700_s13 = int_to_ptr.hbm [resolvable:$true] %s1699_s13 }
0x120b   : > { %v636_v61 = vsel %vm1990_vm6, %v632_v60, %v635_v59  ;;  %s1701_s18 = scalar_lea.hbm %s1700_s13, 32  ;;  %p1706_p1 = scmp.lt.s32.totalorder %s1700_s13, %s2127_s6 }
0x120c   : > { %637 = vst [vmem:[#allocation3 + $0x2] sm:$0x1] %v636_v61  ;;  %p1702_p12 = scmp.ne.s32.totalorder %s1700_s13, %s1701_s18  ;;  %p1707_p2 = scmp.lt.s32.totalorder %s1705_s28, %s1701_s18 }
0x120e   : > { %p1703_p13 = pnand %p1702_p12, %p1843_p4  ;;  %p1708_p3 = por %p1707_p2, %p1706_p1 }
0x1210   : > { %p1704_p0 = pneg %p1703_p13 }
0x1212   : > { %v902_v63 = vpop.permute.xlu0 %901  ;;  %p1709_p5 = pnand %p1708_p3, %p1704_p0 }
0x1213   : > { %v1090_v0 = vld [vmem:[#allocation3 + $0x2] sm:$0x1]  ;;  %v906_v1 = vsel %vm1990_vm6, %v902_v63, %v905_v62 }
0x1214   : > { %1106 = vst [vmem:[#allocation1] ss:$4 sm:$0xff] %v1090_v0  ;;  %v1173_v0 = vperm.slane %v1171_v20, 0 }
0x1215   : > { %907 = vst [vmem:[#allocation3 + $0x5] sm:$0x1] %v906_v1  ;;  %v1176_v1 = vperm.slane %v1171_v20, 3 }
0x121b   : > { %v1107_v4 = vld [vmem:[#allocation1] sm:$0xf] }
0x121c   : > { %1114 = vst [vmem:[#allocation1] ss:$4 sm:$0xff] %v1092_v3  ;;  %v1131_v5 = vunpack.c.l.b16 %v1107_v4  ;;  %v1093_v6 = vld [vmem:[#allocation3 + $0x5] sm:$0x1] }
0x121d   : > { %1118 = vst [vmem:[#allocation1 + $0x20] ss:$4 sm:$0xff] %v1093_v6  ;;  %v1174_v6 = vperm.slane %v1171_v20, 1 }
0x121e   : > { %v1140_v46 = vrot.slane %v1131_v5, 6 }
0x1220   : > { %v1142_v15 = vsel %vm1141_vm8, %v1140_v46, %v1139_v13 }
0x1221   : > { %v1145_v19 = vsel %vm1144_vm9, %v1143_v17, %v1142_v15 }
0x1223   : > { %v1115_v12 = vld [vmem:[#allocation1] sm:$0xf] }
0x1224   : > { %1122 = vst [vmem:[#allocation1] ss:$4 sm:$0xff] %v1094_v11  ;;  %v1133_v16 = vunpack.c.l.b16 %v1115_v12  ;;  %v1119_v51 = vld [vmem:[#allocation1 + $0x20] sm:$0xf] }
0x1225   : > { %v1134_v54 = vunpack.c.l.b16 %v1119_v51 }
0x1226   : > { %v1146_v18 = vrot.slane %v1133_v16, 4 }
0x1227   : > { %v1149_v56 = vrot.slane %v1134_v54, 3 }
0x1228   : > { %v1148_v21 = vsel %vm1147_vm10, %v1146_v18, %v1145_v19 }
0x1229   : > { %v1151_v47 = vsel %vm1150_vm11, %v1149_v56, %v1148_v21 }
0x122b   : > { %v1123_v53 = vld [vmem:[#allocation1] sm:$0xf] }
0x122c   : > { %v1135_v55 = vunpack.c.l.b16 %v1123_v53 }
0x122e   : > { %v1152_v58 = vrot.slane %v1135_v55, 2 }
0x1230   : > { %v1154_v23 = vsel %vm1153_vm12, %v1152_v58, %v1151_v47 }
0x1264   : > { %v1082_v48 = vpop.permute.xlu2 %1081 }
0x1265   : > { %v1086_v49 = vsel %vm1990_vm6, %v1082_v48, %v1085_v45 }
0x1266   : > { %1087 = vst [vmem:[#allocation3 + $0x7] sm:$0x1] %v1086_v49 }
0x126d   : > { %v1095_v52 = vld [vmem:[#allocation3 + $0x7] sm:$0x1] }
0x126e   : > { %1126 = vst [vmem:[#allocation1 + $0x20] ss:$4 sm:$0xff] %v1095_v52 }
0x1275   : > { %v1127_v57 = vld [vmem:[#allocation1 + $0x20] sm:$0xf] }
0x1276   : > { %v1136_v59 = vunpack.c.l.b16 %v1127_v57 }
0x1278   : > { %v1155_v60 = vrot.slane %v1136_v59, 1 }
0x127a   : > { %v1157_v61 = vsel %vm1156_vm13, %v1155_v60, %v1154_v23 }
0x127b   : > { %v1158_v62 = vpack.c.b16 %v1157_v61, %v1157_v61 }
0x127d   : > { %1161 = vst.msk [vmem:[#allocation4] sm:$0xf] %vm1160_vm14, %v1158_v62 }
0x1284   : > { %v1162_v63 = vld [vmem:[#allocation4] sm:$0xf] }
0x1285   : > { %1526 = vmatmul.msk.bf16.vlgmr.msra.gmra.mxu1 %vm330_vm0, %v1162_v63  ;;  %1527 = vmatmul.msk.bf16.vlgmr.msra.gmra.mxu2 %vm330_vm0, %v1162_v63 }
0x1286   : > { %1528 = vmatmul.msk.bf16.vlgmr.msra.gmra.mxu3 %vm330_vm0, %v1162_v63  ;;  %1529 = vmatmul.msk.bf16.vlgmr.msrb.gmra.mxu0 %vm330_vm0, %v1162_v63 }
0x1302   : > { %v1234_v2 = vpop.f32.mrf.mxu1 }
0x1303   : > { %v1235_v3 = vadd.f32 %v1234_v2, %v1173_v0  ;;  %v1273_v4 = vpop.f32.mrf.mxu0 }
0x1304   : > { %v1274_v5 = vadd.f32 %v1273_v4, %v1176_v1 }
0x1305   : > { %1277 = vst [vmem:[%s286_s16] sm:$0xff] %v1235_v3 }
0x1306   : > { %1280 = vst [vmem:[%s286_s16 + $0x18] sm:$0xff] %v1274_v5 }
0x1308   : > { %v1247_v8 = vpop.f32.mrf.mxu2 }
0x1309   : > { %v1248_v46 = vadd.f32 %v1247_v8, %v1174_v6  ;;  %v1260_v9 = vpop.f32.mrf.mxu3 }
0x130a   : > { %v1261_v10 = vadd.f32 %v1260_v9, %v1175_v7  ;;  %v1236_v11 = vpop.f32.mrf.mxu1 }
0x130b   : > { %1278 = vst [vmem:[%s286_s16 + $0x8] sm:$0xff] %v1248_v46  ;;  %v1275_v12 = vpop.f32.mrf.mxu0 }
0x130c   : > { %1279 = vst [vmem:[%s286_s16 + $0x10] sm:$0xff] %v1261_v10 }
0x130d   : > { %1712 = shalt.err (!%p1709_p5)
}
0x130e   : > { %1562 = dma.vmem_to_hbm [thread:$0]  (%p1843_p4), %s1298_s17, 512, %s1300_s12, %s1282_s24  }
0x1310   : > { %v1249_v13 = vpop.f32.mrf.mxu2 }
0x1311   : > { %v1262_v16 = vpop.f32.mrf.mxu3 }
0x1312 PF: > { %p1568_p6 = scmp.ge.s32.totalorder %s1763_s26, 2  ;;  %s1311_s20 = sand.u32 1, %s1743_s21  }
0x1313   : > { %s1312_s11 = scalar_lea.sflag [#allocation6], %s1311_s20 }
0x1314   : > { %p1565_p7 = pnand %p1568_p6, %p1850_p8 }
0x1316   : > { %p1566_p9 = pneg %p1565_p7 }
0x1318   : > { %1738 = dma.done.wait (%p1566_p9), %s1312_s11, 512  }
0x1319   : > { %1740 = vsyncadd (%p1566_p9), %s1312_s11, 4294966784  ;;  %s19_s26 = sadd.s32 1, %s1763_s26   ;;  %s2132_s21 = smov %s1747_s22 }
0x131a   : > { %p16_p10 = scmp.ge.s32.totalorder %s19_s26, 4   ;;  %s2133_s22 = smov %s1751_s23 }
0x131b   : > { %s2134_s23 = smov %s1856_s10  ;;  %s2135_s24 = smov %s1759_s25 }
0x131c   : > { %s2136_s25 = smov %s2138_s29  ;;  %18 = sbr.rel (!%p16_p10) target bundleno = 4 (0x4), region = 104 }
0x1321   :  { %1318 = vsyncpa [#allocation6], 1 }
0x1322   :  { %1320 = vsyncpa [#allocation6 + $0x1], 1 }

</bundles_post_ra>
